<compile_context>
chip_gen: v7x
topology: tpu7x:2x2x1
jax: 0.10.0
libtpu: 0.0.40
codegen_flags: <defaults>
</compile_context>

<pallas_src>
import functools

import jax
import jax.numpy as jnp
from jax.experimental import pallas as pl
from jax.experimental.pallas import tpu as pltpu


_ROW_TILES = (1024, 512, 256, 128, 64, 32, 16)   # bf16-friendly: minimum 16 rows per tile


def _detect_vmem_limit():
    """Per-chip scoped-VMEM limit: ~100 MiB on 128-MiB chips (v5e/v6e), ~51 MiB on v7x."""
    try:
        phys = int(pltpu.get_tpu_info().vmem_capacity_bytes)
    except Exception:
        phys = 128 * 1024 * 1024
    if phys <= 64 * 1024 * 1024:
        return min(52 * 1024 * 1024, int(phys * 0.8))
    return 100 * 1024 * 1024


def _probe_buffered_one():
    """Check whether pipeline_mode=pl.Buffered(1) (single-buffered constant blocks) works."""
    try:
        def _copy(x_ref, o_ref):
            o_ref[...] = x_ref[...]
        fn = pl.pallas_call(
            _copy,
            out_shape=jax.ShapeDtypeStruct((16, 128), jnp.float32),
            grid=(2,),
            in_specs=[pl.BlockSpec((8, 128), lambda i: (0, 0),
                                   pipeline_mode=pl.Buffered(1))],
            out_specs=pl.BlockSpec((8, 128), lambda i: (i, 0)),
        )
        jax.block_until_ready(fn(jnp.zeros((8, 128), jnp.float32)))
        return True
    except Exception:
        return False


_VMEM_LIMIT = _detect_vmem_limit()
_USE_BUFFERED_ONE = _probe_buffered_one()


def _resident(block_shape, index_map):
    """BlockSpec for blocks whose index never changes (weights / bias): single-buffered
    when supported, so they are not pointlessly double-buffered in VMEM."""
    if _USE_BUFFERED_ONE:
        return pl.BlockSpec(block_shape, index_map, pipeline_mode=pl.Buffered(1))
    return pl.BlockSpec(block_shape, index_map)


def _dividing_row_tiles(m):
    tiles = [t for t in _ROW_TILES if t <= m and m % t == 0]
    return tiles if tiles else [m]


def _pick_row_tile(m, per_row_bytes, resident_bytes):
    """Largest row tile whose estimated VMEM footprint fits under ~70% of the limit."""
    budget = int(_VMEM_LIMIT * 0.7)
    tiles = _dividing_row_tiles(m)
    for t in tiles:
        if resident_bytes + t * per_row_bytes <= budget:
            return t
    return tiles[-1]


# --------------------- fused RMSNorm + matmul (fused-QKV projection) ---------------------

def _rmsnorm_matmul_kernel(x_ref, ln_ref, w_ref, o_ref):
    # T5LayerNorm (no mean subtraction, no bias, eps=1e-6) in f32, then bf16 MXU matmul.
    x = x_ref[...].astype(jnp.float32)
    var = jnp.mean(x * x, axis=-1, keepdims=True)
    h = (x * jax.lax.rsqrt(var + 1e-6)) * ln_ref[...]
    o_ref[...] = jnp.dot(h.astype(w_ref.dtype), w_ref[...],
                         preferred_element_type=jnp.float32).astype(o_ref.dtype)


def rmsnorm_matmul(x, ln_w, w):
    """o = rmsnorm(x) @ w   (x: [M,D] bf16, w: [D,N] bf16) -> [M,N] bf16.
    Weight is fully VMEM-resident (constant block index -> one DMA total), grid only over
    tokens, so the RMSNorm runs once per row and the store is full-width lane-dense."""
    M, D = x.shape
    N = w.shape[1]
    w_bytes = D * N * 2 * (1 if _USE_BUFFERED_ONE else 2)
    per_row = 12 * D + 12 * N          # bf16 in/out double-buffers + f32 intermediates/acc
    tm = _pick_row_tile(M, per_row, w_bytes)
    return pl.pallas_call(
        _rmsnorm_matmul_kernel,
        out_shape=jax.ShapeDtypeStruct((M, N), jnp.bfloat16),
        grid=(M // tm,),
        in_specs=[pl.BlockSpec((tm, D), lambda i: (i, 0)),
                  _resident((1, D), lambda i: (0, 0)),
                  _resident((D, N), lambda i: (0, 0))],
        out_specs=pl.BlockSpec((tm, N), lambda i: (i, 0)),
        compiler_params=pltpu.CompilerParams(
            dimension_semantics=("parallel",),
            vmem_limit_bytes=_VMEM_LIMIT),
    )(x, ln_w.reshape(1, D), w)


# ---------- relative-position self-attention + output projection + residual ----------

def _attention_kernel(qkv_ref, bias_ref, mask_ref, wo_ref, res_ref, o_ref, ctx_ref,
                      *, heads, d_head):
    # One batch element per grid step.
    #   qkv_ref  [S, 3*inner] bf16 lane-dense fused QKV slab
    #   bias_ref [H, S, S]    bf16 (constant block -> VMEM-resident across the batch)
    #   mask_ref [1, S]       f32  additive padding mask
    #   wo_ref   [inner, D]   bf16 resident output-projection weight (fused in)
    #   res_ref / o_ref [S,D] bf16 residual, aliased into the output buffer
    #   ctx_ref  [S, inner]   bf16 VMEM scratch slab for per-head contexts
    # T5 does NOT scale attention scores by 1/sqrt(d_head).
    inner = heads * d_head
    mask = mask_ref[...]
    # Heads stay unrolled so MXU pushes are back-to-back (softmax VPU/EUP work of head h
    # hides under the matmuls of head h+1).  Each head's context is cast to bf16 and
    # stored immediately -> no H live f32 tiles and no final concatenate.
    # TODO(synk): d_head-wide slices start at odd 64-lane offsets for odd heads; a
    # head-pair-interleaved wqkv layout would remove the per-head lane shuffles.
    for h in range(heads):
        q = qkv_ref[:, h * d_head:(h + 1) * d_head]
        k = qkv_ref[:, inner + h * d_head:inner + (h + 1) * d_head]
        v = qkv_ref[:, 2 * inner + h * d_head:2 * inner + (h + 1) * d_head]
        scores = jax.lax.dot_general(q, k, (((1,), (1,)), ((), ())),
                                     preferred_element_type=jnp.float32)
        scores = scores + bias_ref[h].astype(jnp.float32) + mask
        m = jnp.max(scores, axis=-1, keepdims=True)
        p = jnp.exp(scores - m)
        denom = jnp.sum(p, axis=-1, keepdims=True)
        attn = (p * pl.reciprocal(denom, approx=True)).astype(v.dtype)
        ctx_ref[:, h * d_head:(h + 1) * d_head] = jnp.dot(
            attn, v, preferred_element_type=jnp.float32).astype(ctx_ref.dtype)
    # Fused output projection + residual add: saves a pallas_call and a full
    # [B*S, inner] bf16 HBM write+read round trip per layer.
    y = jnp.dot(ctx_ref[...], wo_ref[...], preferred_element_type=jnp.float32)
    o_ref[...] = (res_ref[...].astype(jnp.float32) + y).astype(o_ref.dtype)


def attention(qkv, bias, mask_add, wo, x_res, heads, d_head):
    """x_out = x_res + attn(qkv) @ wo, residual aliased into the output buffer."""
    B, S, three_inner = qkv.shape
    inner = heads * d_head
    D = wo.shape[1]
    H = bias.shape[0]
    kernel = functools.partial(_attention_kernel, heads=heads, d_head=d_head)
    # TODO(synk): for S >= ~1024 (especially v7x, 64 MiB VMEM) switch to flash-style
    # q-tiling (grid=(B, S//tq), bias block (H, tq, S)) to bound VMEM independent of S.
    return pl.pallas_call(
        kernel,
        out_shape=jax.ShapeDtypeStruct((B, S, D), jnp.bfloat16),
        grid=(B,),
        in_specs=[pl.BlockSpec((None, S, three_inner), lambda b: (b, 0, 0)),
                  _resident((H, S, S), lambda b: (0, 0, 0)),       # bf16 bias, resident
                  pl.BlockSpec((None, 1, S), lambda b: (b, 0, 0)),
                  _resident((inner, D), lambda b: (0, 0)),         # wo resident
                  pl.BlockSpec((None, S, D), lambda b: (b, 0, 0))],
        out_specs=pl.BlockSpec((None, S, D), lambda b: (b, 0, 0)),
        scratch_shapes=[pltpu.VMEM((S, inner), jnp.bfloat16)],
        input_output_aliases={4: 0},
        compiler_params=pltpu.CompilerParams(
            dimension_semantics=("parallel",),
            vmem_limit_bytes=_VMEM_LIMIT),
    )(qkv, bias, mask_add, wo, x_res)


# --------------------- fused RMSNorm + gated-GELU FFN + residual ---------------------

def _rmsnorm_gated_ffn_kernel(x_ref, ln_ref, wi0_ref, wi1_ref, wo_ref, o_ref):
    x = x_ref[...].astype(jnp.float32)
    var = jnp.mean(x * x, axis=-1, keepdims=True)
    h = ((x * jax.lax.rsqrt(var + 1e-6)) * ln_ref[...]).astype(wi0_ref.dtype)
    g = jax.nn.gelu(jnp.dot(h, wi0_ref[...], preferred_element_type=jnp.float32),
                    approximate=True)
    u = jnp.dot(h, wi1_ref[...], preferred_element_type=jnp.float32)
    gu = (g * u).astype(wo_ref.dtype)                  # bf16 intermediate (fewer store bytes)
    y = jnp.dot(gu, wo_ref[...], preferred_element_type=jnp.float32)
    o_ref[...] = (x + y).astype(o_ref.dtype)


def rmsnorm_gated_ffn(x, ln_w, wi0, wi1, wo):
    """o = x + wo(gelu(wi0(rmsnorm(x))) * wi1(rmsnorm(x))); weights VMEM-resident and
    single-buffered; VMEM-aware row tile bounds the [tm,F] f32 intermediates."""
    M, D = x.shape
    F = wi0.shape[1]
    w_bytes = 3 * D * F * 2 * (1 if _USE_BUFFERED_ONE else 2)
    per_row = 10 * F + 24 * D          # g,u f32 + gu bf16 + x/h/y f32 + bf16 io double-buffers
    tm = _pick_row_tile(M, per_row, w_bytes)
    # TODO(synk): if even the smallest row tile cannot fit (very large d_ff on v7x),
    # tile F inside the kernel with a fori_loop accumulating partial wo products.
    return pl.pallas_call(
        _rmsnorm_gated_ffn_kernel,
        out_shape=jax.ShapeDtypeStruct((M, D), x.dtype),
        grid=(M // tm,),
        in_specs=[pl.BlockSpec((tm, D), lambda i: (i, 0)),
                  _resident((1, D), lambda i: (0, 0)),
                  _resident((D, F), lambda i: (0, 0)),
                  _resident((D, F), lambda i: (0, 0)),
                  _resident((F, D), lambda i: (0, 0))],
        out_specs=pl.BlockSpec((tm, D), lambda i: (i, 0)),
        input_output_aliases={0: 0},
        compiler_params=pltpu.CompilerParams(
            dimension_semantics=("parallel",),
            vmem_limit_bytes=_VMEM_LIMIT),
    )(x, ln_w.reshape(1, D), wi0, wi1, wo)


# --------------------- final RMSNorm ---------------------

def _rmsnorm_kernel(x_ref, ln_ref, o_ref):
    x = x_ref[...].astype(jnp.float32)
    var = jnp.mean(x * x, axis=-1, keepdims=True)
    o_ref[...] = ((x * jax.lax.rsqrt(var + 1e-6)) * ln_ref[...]).astype(o_ref.dtype)


def rmsnorm(x, ln_w, out_dtype=jnp.float32):
    M, D = x.shape
    tm = _pick_row_tile(M, 16 * D, 0)
    return pl.pallas_call(
        _rmsnorm_kernel,
        out_shape=jax.ShapeDtypeStruct((M, D), out_dtype),
        grid=(M // tm,),
        in_specs=[pl.BlockSpec((tm, D), lambda i: (i, 0)),
                  _resident((1, D), lambda i: (0, 0))],
        out_specs=pl.BlockSpec((tm, D), lambda i: (i, 0)),
        compiler_params=pltpu.CompilerParams(
            dimension_semantics=("parallel",),
            vmem_limit_bytes=_VMEM_LIMIT),
    )(x, ln_w.reshape(1, D))


# ------------------------------ JAX glue ----------------------------------

def relative_position_bucket(rel_pos, num_buckets=32, max_distance=128):
    """Bidirectional T5 relative-position bucketing (HF semantics)."""
    num_buckets = num_buckets // 2
    bucket = (rel_pos > 0).astype(jnp.int32) * num_buckets
    n = jnp.abs(rel_pos)
    max_exact = num_buckets // 2
    is_small = n < max_exact
    val_if_large = max_exact + (
        jnp.log(jnp.maximum(n, 1).astype(jnp.float32) / max_exact)
        / jnp.log(max_distance / max_exact)
        * (num_buckets - max_exact)
    ).astype(jnp.int32)
    val_if_large = jnp.minimum(val_if_large, num_buckets - 1)
    return bucket + jnp.where(is_small, n, val_if_large)


def init_params(key, vocab, d_model, heads, d_head, d_ff, n_layers, num_buckets=32):
    inner = heads * d_head
    keys = list(jax.random.split(key, 2 + 7 * n_layers))
    ki = iter(keys)

    def w(shape, scale):
        return (scale * jax.random.normal(next(ki), shape, jnp.float32)).astype(jnp.bfloat16)

    params = {
        "embed": w((vocab, d_model), 1.0),
        "rel_bias": 0.1 * jax.random.normal(next(ki), (num_buckets, heads), jnp.float32),
        "final_ln": jnp.ones((d_model,), jnp.float32),
        "layers": [],
    }
    for _ in range(n_layers):
        wq = w((d_model, inner), (d_model * d_head) ** -0.5)
        wk = w((d_model, inner), d_model ** -0.5)
        wv = w((d_model, inner), d_model ** -0.5)
        params["layers"].append({
            "ln1": jnp.ones((d_model,), jnp.float32),
            "wqkv": jnp.concatenate([wq, wk, wv], axis=1),   # fused QKV weight [D, 3*inner]
            "wo": w((inner, d_model), inner ** -0.5),
            "ln2": jnp.ones((d_model,), jnp.float32),
            "wi0": w((d_model, d_ff), d_model ** -0.5),
            "wi1": w((d_model, d_ff), d_model ** -0.5),
            "wo_ff": w((d_ff, d_model), d_ff ** -0.5),
        })
    return params


@functools.partial(jax.jit, static_argnums=(2, 3, 4))
def mgen_encoder_forward(params, tokens, padding_idx, heads, d_head):
    """Equivalent of ParlaimGENEncoder.forward: returns (hidden, mask)."""
    B, S = tokens.shape
    D = params["embed"].shape[1]
    inner = heads * d_head

    # mask = input != self.padding_idx
    mask = tokens != padding_idx
    mask_add = jnp.where(mask, 0.0, -1e9).astype(jnp.float32).reshape(B, 1, S)

    # Relative-position bias (shared across layers in T5).  Kept in bf16: halves VMEM
    # residency and per-layer HBM reads; upcast to f32 inside the kernel for the add.
    ctx_pos = jnp.arange(S)[:, None]
    mem_pos = jnp.arange(S)[None, :]
    buckets = relative_position_bucket(mem_pos - ctx_pos)
    bias = jnp.transpose(params["rel_bias"][buckets], (2, 0, 1)).astype(jnp.bfloat16)  # [H,S,S]

    # Embedding gather (glue; mT5 encoder does not scale embeddings). Activations in bf16.
    x = params["embed"][tokens].reshape(B * S, D).astype(jnp.bfloat16)

    for layer in params["layers"]:
        # --- self-attention block ---
        qkv = rmsnorm_matmul(x, layer["ln1"], layer["wqkv"])            # [B*S, 3*inner]
        x = attention(qkv.reshape(B, S, 3 * inner), bias, mask_add,
                      layer["wo"], x.reshape(B, S, D), heads, d_head)    # attn + out-proj + residual
        x = x.reshape(B * S, D)
        # --- gated-GELU feed-forward block: RMSNorm + residual fused ---
        x = rmsnorm_gated_ffn(x, layer["ln2"], layer["wi0"], layer["wi1"],
                              layer["wo_ff"])

    hidden = rmsnorm(x, params["final_ln"], out_dtype=jnp.float32)
    return hidden.reshape(B, S, D), mask


# ------------------------------- main --------------------------------------

if __name__ == "__main__":
    # TODO(synk): set_device / torch.cuda.set_device and T5Stack.parallelize are
    # device-placement only (no compute) and have no Pallas equivalent.
    B, S = 2, 8
    vocab, d_model, heads, d_head, d_ff, n_layers = 50, 32, 4, 8, 64, 2
    padding_idx = 0

    key = jax.random.PRNGKey(0)
    k_tok, k_par = jax.random.split(key)

    tokens = jax.random.randint(k_tok, (B, S), 1, vocab, dtype=jnp.int32)
    tokens = tokens.at[0, 6:].set(padding_idx)   # exercise the padding mask
    tokens = tokens.at[1, 5:].set(padding_idx)

    params = init_params(k_par, vocab, d_model, heads, d_head, d_ff, n_layers)

    hidden, mask = mgen_encoder_forward(params, tokens, padding_idx, heads, d_head)
    jax.block_until_ready((hidden, mask))

    assert hidden.shape == (B, S, d_model) and hidden.dtype == jnp.float32
    assert mask.shape == (B, S) and mask.dtype == jnp.bool_
    print("KERNEL_OK")
</pallas_src>

<mosaic_0001>
module attributes {stable_mosaic.version = 11 : i64} {
  func.func @_copy(%arg0: i32, %arg1: memref<8x128xf32, #tpu.memory_space<vmem>>, %arg2: memref<8x128xf32, #tpu.memory_space<vmem>>) attributes {dimension_semantics = [#tpu.dimension_semantics<arbitrary>], iteration_bounds = array<i64: 2>, scalar_prefetch = 0 : i64, scratch_operands = 0 : i64, tpu.core_type = #tpu.core_type<tc>, window_params = [{pipeline_mode = #tpu.pipeline_mode<synchronous>, transform_indices = @transform_0, window_bounds = array<i64: 8, 128>}, {transform_indices = @transform_1, window_bounds = array<i64: 8, 128>}]} {
    %c0 = arith.constant 0 : index
    %c0_0 = arith.constant 0 : index
    %0 = vector.load %arg1[%c0, %c0_0] : memref<8x128xf32, #tpu.memory_space<vmem>>, vector<8x128xf32>
    %c0_1 = arith.constant 0 : index
    %c0_2 = arith.constant 0 : index
    %1 = vector.load %arg2[%c0_1, %c0_2] : memref<8x128xf32, #tpu.memory_space<vmem>>, vector<8x128xf32>
    tpu.vector_store %arg2[%c0_1, %c0_2], %0 {strides = array<i32>} : memref<8x128xf32, #tpu.memory_space<vmem>>, vector<8x128xf32>,
    return
  }
  func.func @transform_0(%arg0: i32) -> (i32, i32) {
    %c0_i32 = arith.constant 0 : i32
    %c0_i32_0 = arith.constant 0 : i32
    %c0_i32_1 = arith.constant 0 : i32
    return %c0_i32, %c0_i32_0 : i32, i32
  }
  func.func @transform_1(%arg0: i32) -> (i32, i32) {
    %c0_i32 = arith.constant 0 : i32
    %c0_i32_0 = arith.constant 0 : i32
    return %arg0, %c0_i32 : i32, i32
  }
}

module attributes {stable_mosaic.version = 11 : i64} {
  func.func @_rmsnorm_kernel(%arg0: i32, %arg1: memref<16x32xbf16, #tpu.memory_space<vmem>>, %arg2: memref<1x32xf32, #tpu.memory_space<vmem>>, %arg3: memref<16x32xf32, #tpu.memory_space<vmem>>) attributes {dimension_semantics = [#tpu.dimension_semantics<parallel>], iteration_bounds = array<i64: 1>, scalar_prefetch = 0 : i64, scratch_operands = 0 : i64, tpu.core_type = #tpu.core_type<tc>, window_params = [{transform_indices = @transform_0, window_bounds = array<i64: 16, 32>}, {pipeline_mode = #tpu.pipeline_mode<synchronous>, transform_indices = @transform_1, window_bounds = array<i64: 1, 32>}, {transform_indices = @transform_2, window_bounds = array<i64: 16, 32>}]} {
    %c0 = arith.constant 0 : index
    %c0_0 = arith.constant 0 : index
    %0 = vector.load %arg1[%c0, %c0_0] : memref<16x32xbf16, #tpu.memory_space<vmem>>, vector<16x32xbf16>
    %1 = arith.extf %0 : vector<16x32xbf16> to vector<16x32xf32>
    %2 = arith.mulf %1, %1 : vector<16x32xf32>
    %cst = arith.constant dense<0.000000e+00> : vector<16xf32>
    %3 = vector.multi_reduction <add>, %2, %cst [1] : vector<16x32xf32> to vector<16xf32>
    %4 = vector.shape_cast %3 : vector<16xf32> to vector<16x1xf32>
    %cst_1 = arith.constant 3.200000e+01 : f32
    %5 = vector.broadcast %cst_1 : f32 to vector<16x1xf32>
    %6 = arith.divf %4, %5 : vector<16x1xf32>
    %cst_2 = arith.constant 9.99999997E-7 : f32
    %7 = vector.broadcast %cst_2 : f32 to vector<16x1xf32>
    %8 = arith.addf %6, %7 : vector<16x1xf32>
    %9 = math.rsqrt %8 : vector<16x1xf32>
    %10 = vector.broadcast %9 : vector<16x1xf32> to vector<16x32xf32>
    %11 = arith.mulf %1, %10 : vector<16x32xf32>
    %c0_3 = arith.constant 0 : index
    %c0_4 = arith.constant 0 : index
    %12 = vector.load %arg2[%c0_3, %c0_4] : memref<1x32xf32, #tpu.memory_space<vmem>>, vector<1x32xf32>
    %13 = vector.broadcast %12 : vector<1x32xf32> to vector<16x32xf32>
    %14 = arith.mulf %11, %13 : vector<16x32xf32>
    %c0_5 = arith.constant 0 : index
    %c0_6 = arith.constant 0 : index
    %15 = vector.load %arg3[%c0_5, %c0_6] : memref<16x32xf32, #tpu.memory_space<vmem>>, vector<16x32xf32>
    tpu.vector_store %arg3[%c0_5, %c0_6], %14 {strides = array<i32>} : memref<16x32xf32, #tpu.memory_space<vmem>>, vector<16x32xf32>,
    return
  }
  func.func @transform_0(%arg0: i32) -> (i32, i32) {
    %c0_i32 = arith.constant 0 : i32
    %c0_i32_0 = arith.constant 0 : i32
    return %arg0, %c0_i32 : i32, i32
  }
  func.func @transform_1(%arg0: i32) -> (i32, i32) {
    %c0_i32 = arith.constant 0 : i32
    %c0_i32_0 = arith.constant 0 : i32
    %c0_i32_1 = arith.constant 0 : i32
    return %c0_i32, %c0_i32_0 : i32, i32
  }
  func.func @transform_2(%arg0: i32) -> (i32, i32) {
    %c0_i32 = arith.constant 0 : i32
    %c0_i32_0 = arith.constant 0 : i32
    return %arg0, %c0_i32 : i32, i32
  }
}

module attributes {stable_mosaic.version = 11 : i64} {
  func.func @_rmsnorm_matmul_kernel(%arg0: i32, %arg1: memref<16x32xbf16, #tpu.memory_space<vmem>>, %arg2: memref<1x32xf32, #tpu.memory_space<vmem>>, %arg3: memref<32x96xbf16, #tpu.memory_space<vmem>>, %arg4: memref<16x96xbf16, #tpu.memory_space<vmem>>) attributes {dimension_semantics = [#tpu.dimension_semantics<parallel>], iteration_bounds = array<i64: 1>, scalar_prefetch = 0 : i64, scratch_operands = 0 : i64, tpu.core_type = #tpu.core_type<tc>, window_params = [{transform_indices = @transform_0, window_bounds = array<i64: 16, 32>}, {pipeline_mode = #tpu.pipeline_mode<synchronous>, transform_indices = @transform_1, window_bounds = array<i64: 1, 32>}, {pipeline_mode = #tpu.pipeline_mode<synchronous>, transform_indices = @transform_2, window_bounds = array<i64: 32, 96>}, {transform_indices = @transform_3, window_bounds = array<i64: 16, 96>}]} {
    %c0 = arith.constant 0 : index
    %c0_0 = arith.constant 0 : index
    %0 = vector.load %arg1[%c0, %c0_0] : memref<16x32xbf16, #tpu.memory_space<vmem>>, vector<16x32xbf16>
    %1 = arith.extf %0 : vector<16x32xbf16> to vector<16x32xf32>
    %2 = arith.mulf %1, %1 : vector<16x32xf32>
    %cst = arith.constant dense<0.000000e+00> : vector<16xf32>
    %3 = vector.multi_reduction <add>, %2, %cst [1] : vector<16x32xf32> to vector<16xf32>
    %4 = vector.shape_cast %3 : vector<16xf32> to vector<16x1xf32>
    %cst_1 = arith.constant 3.200000e+01 : f32
    %5 = vector.broadcast %cst_1 : f32 to vector<16x1xf32>
    %6 = arith.divf %4, %5 : vector<16x1xf32>
    %cst_2 = arith.constant 9.99999997E-7 : f32
    %7 = vector.broadcast %cst_2 : f32 to vector<16x1xf32>
    %8 = arith.addf %6, %7 : vector<16x1xf32>
    %9 = math.rsqrt %8 : vector<16x1xf32>
    %10 = vector.broadcast %9 : vector<16x1xf32> to vector<16x32xf32>
    %11 = arith.mulf %1, %10 : vector<16x32xf32>
    %c0_3 = arith.constant 0 : index
    %c0_4 = arith.constant 0 : index
    %12 = vector.load %arg2[%c0_3, %c0_4] : memref<1x32xf32, #tpu.memory_space<vmem>>, vector<1x32xf32>
    %13 = vector.broadcast %12 : vector<1x32xf32> to vector<16x32xf32>
    %14 = arith.mulf %11, %13 : vector<16x32xf32>
    %15 = arith.truncf %14 : vector<16x32xf32> to vector<16x32xbf16>
    %c0_5 = arith.constant 0 : index
    %c0_6 = arith.constant 0 : index
    %16 = vector.load %arg3[%c0_5, %c0_6] : memref<32x96xbf16, #tpu.memory_space<vmem>>, vector<32x96xbf16>
    %cst_7 = arith.constant dense<0.000000e+00> : vector<16x96xf32>
    %17 = tpu.matmul %15, %16, %cst_7 {dimension_numbers = #tpu.dot_dimension_numbers<[1], [0], [0], [1], [0, 0, 1, 1], [], []>} : vector<16x32xbf16>, vector<32x96xbf16>, vector<16x96xf32> -> vector<16x96xf32>
    %18 = arith.truncf %17 : vector<16x96xf32> to vector<16x96xbf16>
    %c0_8 = arith.constant 0 : index
    %c0_9 = arith.constant 0 : index
    %19 = vector.load %arg4[%c0_8, %c0_9] : memref<16x96xbf16, #tpu.memory_space<vmem>>, vector<16x96xbf16>
    tpu.vector_store %arg4[%c0_8, %c0_9], %18 {strides = array<i32>} : memref<16x96xbf16, #tpu.memory_space<vmem>>, vector<16x96xbf16>,
    return
  }
  func.func @transform_0(%arg0: i32) -> (i32, i32) {
    %c0_i32 = arith.constant 0 : i32
    %c0_i32_0 = arith.constant 0 : i32
    return %arg0, %c0_i32 : i32, i32
  }
  func.func @transform_1(%arg0: i32) -> (i32, i32) {
    %c0_i32 = arith.constant 0 : i32
    %c0_i32_0 = arith.constant 0 : i32
    %c0_i32_1 = arith.constant 0 : i32
    return %c0_i32, %c0_i32_0 : i32, i32
  }
  func.func @transform_2(%arg0: i32) -> (i32, i32) {
    %c0_i32 = arith.constant 0 : i32
    %c0_i32_0 = arith.constant 0 : i32
    %c0_i32_1 = arith.constant 0 : i32
    return %c0_i32, %c0_i32_0 : i32, i32
  }
  func.func @transform_3(%arg0: i32) -> (i32, i32) {
    %c0_i32 = arith.constant 0 : i32
    %c0_i32_0 = arith.constant 0 : i32
    return %arg0, %c0_i32 : i32, i32
  }
}

module attributes {stable_mosaic.version = 11 : i64} {
  func.func @_attention_kernel(%arg0: i32, %arg1: memref<1x8x96xbf16, #tpu.memory_space<vmem>>, %arg2: memref<4x8x8xbf16, #tpu.memory_space<vmem>>, %arg3: memref<1x1x8xf32, #tpu.memory_space<vmem>>, %arg4: memref<32x32xbf16, #tpu.memory_space<vmem>>, %arg5: memref<1x8x32xbf16, #tpu.memory_space<vmem>>, %arg6: memref<1x8x32xbf16, #tpu.memory_space<vmem>>, %arg7: memref<8x32xbf16, #tpu.memory_space<vmem>>) attributes {dimension_semantics = [#tpu.dimension_semantics<parallel>], iteration_bounds = array<i64: 2>, scalar_prefetch = 0 : i64, scratch_operands = 1 : i64, tpu.core_type = #tpu.core_type<tc>, window_params = [{transform_indices = @transform_0, window_bounds = array<i64: 1, 8, 96>}, {pipeline_mode = #tpu.pipeline_mode<synchronous>, transform_indices = @transform_1, window_bounds = array<i64: 4, 8, 8>}, {transform_indices = @transform_2, window_bounds = array<i64: 1, 1, 8>}, {pipeline_mode = #tpu.pipeline_mode<synchronous>, transform_indices = @transform_3, window_bounds = array<i64: 32, 32>}, {transform_indices = @transform_4, window_bounds = array<i64: 1, 8, 32>}, {transform_indices = @transform_5, window_bounds = array<i64: 1, 8, 32>}]} {
    %c0 = arith.constant 0 : index
    %c0_0 = arith.constant 0 : index
    %c0_1 = arith.constant 0 : index
    %0 = vector.load %arg3[%c0, %c0_0, %c0_1] : memref<1x1x8xf32, #tpu.memory_space<vmem>>, vector<1x1x8xf32>
    %1 = vector.shape_cast %0 : vector<1x1x8xf32> to vector<1x8xf32>
    %c0_2 = arith.constant 0 : index
    %c0_3 = arith.constant 0 : index
    %c0_4 = arith.constant 0 : index
    %2 = vector.load %arg1[%c0_2, %c0_3, %c0_4] : memref<1x8x96xbf16, #tpu.memory_space<vmem>>, vector<1x8x8xbf16>
    %3 = vector.shape_cast %2 : vector<1x8x8xbf16> to vector<8x8xbf16>
    %c0_5 = arith.constant 0 : index
    %c0_6 = arith.constant 0 : index
    %c32 = arith.constant 32 : index
    %4 = vector.load %arg1[%c0_5, %c0_6, %c32] : memref<1x8x96xbf16, #tpu.memory_space<vmem>>, vector<1x8x8xbf16>
    %5 = vector.shape_cast %4 : vector<1x8x8xbf16> to vector<8x8xbf16>
    %c0_7 = arith.constant 0 : index
    %c0_8 = arith.constant 0 : index
    %c64 = arith.constant 64 : index
    %6 = vector.load %arg1[%c0_7, %c0_8, %c64] : memref<1x8x96xbf16, #tpu.memory_space<vmem>>, vector<1x8x8xbf16>
    %7 = vector.shape_cast %6 : vector<1x8x8xbf16> to vector<8x8xbf16>
    %cst = arith.constant dense<0.000000e+00> : vector<8x8xf32>
    %8 = tpu.matmul %3, %5, %cst {dimension_numbers = #tpu.dot_dimension_numbers<[1], [1], [0], [0], [0, 0, 1, 0], [], []>} : vector<8x8xbf16>, vector<8x8xbf16>, vector<8x8xf32> -> vector<8x8xf32>
    %c0_9 = arith.constant 0 : index
    %c0_10 = arith.constant 0 : index
    %c0_11 = arith.constant 0 : index
    %9 = vector.load %arg2[%c0_9, %c0_10, %c0_11] : memref<4x8x8xbf16, #tpu.memory_space<vmem>>, vector<1x8x8xbf16>
    %10 = vector.shape_cast %9 : vector<1x8x8xbf16> to vector<8x8xbf16>
    %11 = arith.extf %10 : vector<8x8xbf16> to vector<8x8xf32>
    %12 = arith.addf %8, %11 : vector<8x8xf32>
    %13 = vector.broadcast %1 : vector<1x8xf32> to vector<8x8xf32>
    %14 = arith.addf %12, %13 : vector<8x8xf32>
    %cst_12 = arith.constant dense<0xFF800000> : vector<8xf32>
    %15 = vector.multi_reduction <maximumf>, %14, %cst_12 [1] : vector<8x8xf32> to vector<8xf32>
    %16 = vector.shape_cast %15 : vector<8xf32> to vector<8x1xf32>
    %17 = vector.broadcast %16 : vector<8x1xf32> to vector<8x8xf32>
    %18 = arith.subf %14, %17 : vector<8x8xf32>
    %19 = math.exp %18 : vector<8x8xf32>
    %cst_13 = arith.constant dense<0.000000e+00> : vector<8xf32>
    %20 = vector.multi_reduction <add>, %19, %cst_13 [1] : vector<8x8xf32> to vector<8xf32>
    %21 = vector.shape_cast %20 : vector<8xf32> to vector<8x1xf32>
    %22 = tpu.reciprocal %21 {approx = true} : vector<8x1xf32> -> vector<8x1xf32>
    %23 = vector.broadcast %22 : vector<8x1xf32> to vector<8x8xf32>
    %24 = arith.mulf %19, %23 : vector<8x8xf32>
    %25 = arith.truncf %24 : vector<8x8xf32> to vector<8x8xbf16>
    %cst_14 = arith.constant dense<0.000000e+00> : vector<8x8xf32>
    %26 = tpu.matmul %25, %7, %cst_14 {dimension_numbers = #tpu.dot_dimension_numbers<[1], [0], [0], [1], [0, 0, 1, 1], [], []>} : vector<8x8xbf16>, vector<8x8xbf16>, vector<8x8xf32> -> vector<8x8xf32>
    %27 = arith.truncf %26 : vector<8x8xf32> to vector<8x8xbf16>
    %c0_15 = arith.constant 0 : index
    %c0_16 = arith.constant 0 : index
    %28 = vector.load %arg7[%c0_15, %c0_16] : memref<8x32xbf16, #tpu.memory_space<vmem>>, vector<8x8xbf16>
    tpu.vector_store %arg7[%c0_15, %c0_16], %27 {strides = array<i32>} : memref<8x32xbf16, #tpu.memory_space<vmem>>, vector<8x8xbf16>,
    %c0_17 = arith.constant 0 : index
    %c0_18 = arith.constant 0 : index
    %c8 = arith.constant 8 : index
    %29 = vector.load %arg1[%c0_17, %c0_18, %c8] : memref<1x8x96xbf16, #tpu.memory_space<vmem>>, vector<1x8x8xbf16>
    %30 = vector.shape_cast %29 : vector<1x8x8xbf16> to vector<8x8xbf16>
    %c0_19 = arith.constant 0 : index
    %c0_20 = arith.constant 0 : index
    %c40 = arith.constant 40 : index
    %31 = vector.load %arg1[%c0_19, %c0_20, %c40] : memref<1x8x96xbf16, #tpu.memory_space<vmem>>, vector<1x8x8xbf16>
    %32 = vector.shape_cast %31 : vector<1x8x8xbf16> to vector<8x8xbf16>
    %c0_21 = arith.constant 0 : index
    %c0_22 = arith.constant 0 : index
    %c72 = arith.constant 72 : index
    %33 = vector.load %arg1[%c0_21, %c0_22, %c72] : memref<1x8x96xbf16, #tpu.memory_space<vmem>>, vector<1x8x8xbf16>
    %34 = vector.shape_cast %33 : vector<1x8x8xbf16> to vector<8x8xbf16>
    %cst_23 = arith.constant dense<0.000000e+00> : vector<8x8xf32>
    %35 = tpu.matmul %30, %32, %cst_23 {dimension_numbers = #tpu.dot_dimension_numbers<[1], [1], [0], [0], [0, 0, 1, 0], [], []>} : vector<8x8xbf16>, vector<8x8xbf16>, vector<8x8xf32> -> vector<8x8xf32>
    %c1 = arith.constant 1 : index
    %c0_24 = arith.constant 0 : index
    %c0_25 = arith.constant 0 : index
    %36 = vector.load %arg2[%c1, %c0_24, %c0_25] : memref<4x8x8xbf16, #tpu.memory_space<vmem>>, vector<1x8x8xbf16>
    %37 = vector.shape_cast %36 : vector<1x8x8xbf16> to vector<8x8xbf16>
    %38 = arith.extf %37 : vector<8x8xbf16> to vector<8x8xf32>
    %39 = arith.addf %35, %38 : vector<8x8xf32>
    %40 = vector.broadcast %1 : vector<1x8xf32> to vector<8x8xf32>
    %41 = arith.addf %39, %40 : vector<8x8xf32>
    %cst_26 = arith.constant dense<0xFF800000> : vector<8xf32>
    %42 = vector.multi_reduction <maximumf>, %41, %cst_26 [1] : vector<8x8xf32> to vector<8xf32>
    %43 = vector.shape_cast %42 : vector<8xf32> to vector<8x1xf32>
    %44 = vector.broadcast %43 : vector<8x1xf32> to vector<8x8xf32>
    %45 = arith.subf %41, %44 : vector<8x8xf32>
    %46 = math.exp %45 : vector<8x8xf32>
    %cst_27 = arith.constant dense<0.000000e+00> : vector<8xf32>
    %47 = vector.multi_reduction <add>, %46, %cst_27 [1] : vector<8x8xf32> to vector<8xf32>
    %48 = vector.shape_cast %47 : vector<8xf32> to vector<8x1xf32>
    %49 = tpu.reciprocal %48 {approx = true} : vector<8x1xf32> -> vector<8x1xf32>
    %50 = vector.broadcast %49 : vector<8x1xf32> to vector<8x8xf32>
    %51 = arith.mulf %46, %50 : vector<8x8xf32>
    %52 = arith.truncf %51 : vector<8x8xf32> to vector<8x8xbf16>
    %cst_28 = arith.constant dense<0.000000e+00> : vector<8x8xf32>
    %53 = tpu.matmul %52, %34, %cst_28 {dimension_numbers = #tpu.dot_dimension_numbers<[1], [0], [0], [1], [0, 0, 1, 1], [], []>} : vector<8x8xbf16>, vector<8x8xbf16>, vector<8x8xf32> -> vector<8x8xf32>
    %54 = arith.truncf %53 : vector<8x8xf32> to vector<8x8xbf16>
    %c0_29 = arith.constant 0 : index
    %c8_30 = arith.constant 8 : index
    %55 = vector.load %arg7[%c0_29, %c8_30] : memref<8x32xbf16, #tpu.memory_space<vmem>>, vector<8x8xbf16>
    tpu.vector_store %arg7[%c0_29, %c8_30], %54 {strides = array<i32>} : memref<8x32xbf16, #tpu.memory_space<vmem>>, vector<8x8xbf16>,
    %c0_31 = arith.constant 0 : index
    %c0_32 = arith.constant 0 : index
    %c16 = arith.constant 16 : index
    %56 = vector.load %arg1[%c0_31, %c0_32, %c16] : memref<1x8x96xbf16, #tpu.memory_space<vmem>>, vector<1x8x8xbf16>
    %57 = vector.shape_cast %56 : vector<1x8x8xbf16> to vector<8x8xbf16>
    %c0_33 = arith.constant 0 : index
    %c0_34 = arith.constant 0 : index
    %c48 = arith.constant 48 : index
    %58 = vector.load %arg1[%c0_33, %c0_34, %c48] : memref<1x8x96xbf16, #tpu.memory_space<vmem>>, vector<1x8x8xbf16>
    %59 = vector.shape_cast %58 : vector<1x8x8xbf16> to vector<8x8xbf16>
    %c0_35 = arith.constant 0 : index
    %c0_36 = arith.constant 0 : index
    %c80 = arith.constant 80 : index
    %60 = vector.load %arg1[%c0_35, %c0_36, %c80] : memref<1x8x96xbf16, #tpu.memory_space<vmem>>, vector<1x8x8xbf16>
    %61 = vector.shape_cast %60 : vector<1x8x8xbf16> to vector<8x8xbf16>
    %cst_37 = arith.constant dense<0.000000e+00> : vector<8x8xf32>
    %62 = tpu.matmul %57, %59, %cst_37 {dimension_numbers = #tpu.dot_dimension_numbers<[1], [1], [0], [0], [0, 0, 1, 0], [], []>} : vector<8x8xbf16>, vector<8x8xbf16>, vector<8x8xf32> -> vector<8x8xf32>
    %c2 = arith.constant 2 : index
    %c0_38 = arith.constant 0 : index
    %c0_39 = arith.constant 0 : index
    %63 = vector.load %arg2[%c2, %c0_38, %c0_39] : memref<4x8x8xbf16, #tpu.memory_space<vmem>>, vector<1x8x8xbf16>
    %64 = vector.shape_cast %63 : vector<1x8x8xbf16> to vector<8x8xbf16>
    %65 = arith.extf %64 : vector<8x8xbf16> to vector<8x8xf32>
    %66 = arith.addf %62, %65 : vector<8x8xf32>
    %67 = vector.broadcast %1 : vector<1x8xf32> to vector<8x8xf32>
    %68 = arith.addf %66, %67 : vector<8x8xf32>
    %cst_40 = arith.constant dense<0xFF800000> : vector<8xf32>
    %69 = vector.multi_reduction <maximumf>, %68, %cst_40 [1] : vector<8x8xf32> to vector<8xf32>
    %70 = vector.shape_cast %69 : vector<8xf32> to vector<8x1xf32>
    %71 = vector.broadcast %70 : vector<8x1xf32> to vector<8x8xf32>
    %72 = arith.subf %68, %71 : vector<8x8xf32>
    %73 = math.exp %72 : vector<8x8xf32>
    %cst_41 = arith.constant dense<0.000000e+00> : vector<8xf32>
    %74 = vector.multi_reduction <add>, %73, %cst_41 [1] : vector<8x8xf32> to vector<8xf32>
    %75 = vector.shape_cast %74 : vector<8xf32> to vector<8x1xf32>
    %76 = tpu.reciprocal %75 {approx = true} : vector<8x1xf32> -> vector<8x1xf32>
    %77 = vector.broadcast %76 : vector<8x1xf32> to vector<8x8xf32>
    %78 = arith.mulf %73, %77 : vector<8x8xf32>
    %79 = arith.truncf %78 : vector<8x8xf32> to vector<8x8xbf16>
    %cst_42 = arith.constant dense<0.000000e+00> : vector<8x8xf32>
    %80 = tpu.matmul %79, %61, %cst_42 {dimension_numbers = #tpu.dot_dimension_numbers<[1], [0], [0], [1], [0, 0, 1, 1], [], []>} : vector<8x8xbf16>, vector<8x8xbf16>, vector<8x8xf32> -> vector<8x8xf32>
    %81 = arith.truncf %80 : vector<8x8xf32> to vector<8x8xbf16>
    %c0_43 = arith.constant 0 : index
    %c16_44 = arith.constant 16 : index
    %82 = vector.load %arg7[%c0_43, %c16_44] : memref<8x32xbf16, #tpu.memory_space<vmem>>, vector<8x8xbf16>
    tpu.vector_store %arg7[%c0_43, %c16_44], %81 {strides = array<i32>} : memref<8x32xbf16, #tpu.memory_space<vmem>>, vector<8x8xbf16>,
    %c0_45 = arith.constant 0 : index
    %c0_46 = arith.constant 0 : index
    %c24 = arith.constant 24 : index
    %83 = vector.load %arg1[%c0_45, %c0_46, %c24] : memref<1x8x96xbf16, #tpu.memory_space<vmem>>, vector<1x8x8xbf16>
    %84 = vector.shape_cast %83 : vector<1x8x8xbf16> to vector<8x8xbf16>
    %c0_47 = arith.constant 0 : index
    %c0_48 = arith.constant 0 : index
    %c56 = arith.constant 56 : index
    %85 = vector.load %arg1[%c0_47, %c0_48, %c56] : memref<1x8x96xbf16, #tpu.memory_space<vmem>>, vector<1x8x8xbf16>
    %86 = vector.shape_cast %85 : vector<1x8x8xbf16> to vector<8x8xbf16>
    %c0_49 = arith.constant 0 : index
    %c0_50 = arith.constant 0 : index
    %c88 = arith.constant 88 : index
    %87 = vector.load %arg1[%c0_49, %c0_50, %c88] : memref<1x8x96xbf16, #tpu.memory_space<vmem>>, vector<1x8x8xbf16>
    %88 = vector.shape_cast %87 : vector<1x8x8xbf16> to vector<8x8xbf16>
    %cst_51 = arith.constant dense<0.000000e+00> : vector<8x8xf32>
    %89 = tpu.matmul %84, %86, %cst_51 {dimension_numbers = #tpu.dot_dimension_numbers<[1], [1], [0], [0], [0, 0, 1, 0], [], []>} : vector<8x8xbf16>, vector<8x8xbf16>, vector<8x8xf32> -> vector<8x8xf32>
    %c3 = arith.constant 3 : index
    %c0_52 = arith.constant 0 : index
    %c0_53 = arith.constant 0 : index
    %90 = vector.load %arg2[%c3, %c0_52, %c0_53] : memref<4x8x8xbf16, #tpu.memory_space<vmem>>, vector<1x8x8xbf16>
    %91 = vector.shape_cast %90 : vector<1x8x8xbf16> to vector<8x8xbf16>
    %92 = arith.extf %91 : vector<8x8xbf16> to vector<8x8xf32>
    %93 = arith.addf %89, %92 : vector<8x8xf32>
    %94 = vector.broadcast %1 : vector<1x8xf32> to vector<8x8xf32>
    %95 = arith.addf %93, %94 : vector<8x8xf32>
    %cst_54 = arith.constant dense<0xFF800000> : vector<8xf32>
    %96 = vector.multi_reduction <maximumf>, %95, %cst_54 [1] : vector<8x8xf32> to vector<8xf32>
    %97 = vector.shape_cast %96 : vector<8xf32> to vector<8x1xf32>
    %98 = vector.broadcast %97 : vector<8x1xf32> to vector<8x8xf32>
    %99 = arith.subf %95, %98 : vector<8x8xf32>
    %100 = math.exp %99 : vector<8x8xf32>
    %cst_55 = arith.constant dense<0.000000e+00> : vector<8xf32>
    %101 = vector.multi_reduction <add>, %100, %cst_55 [1] : vector<8x8xf32> to vector<8xf32>
    %102 = vector.shape_cast %101 : vector<8xf32> to vector<8x1xf32>
    %103 = tpu.reciprocal %102 {approx = true} : vector<8x1xf32> -> vector<8x1xf32>
    %104 = vector.broadcast %103 : vector<8x1xf32> to vector<8x8xf32>
    %105 = arith.mulf %100, %104 : vector<8x8xf32>
    %106 = arith.truncf %105 : vector<8x8xf32> to vector<8x8xbf16>
    %cst_56 = arith.constant dense<0.000000e+00> : vector<8x8xf32>
    %107 = tpu.matmul %106, %88, %cst_56 {dimension_numbers = #tpu.dot_dimension_numbers<[1], [0], [0], [1], [0, 0, 1, 1], [], []>} : vector<8x8xbf16>, vector<8x8xbf16>, vector<8x8xf32> -> vector<8x8xf32>
    %108 = arith.truncf %107 : vector<8x8xf32> to vector<8x8xbf16>
    %c0_57 = arith.constant 0 : index
    %c24_58 = arith.constant 24 : index
    %109 = vector.load %arg7[%c0_57, %c24_58] : memref<8x32xbf16, #tpu.memory_space<vmem>>, vector<8x8xbf16>
    tpu.vector_store %arg7[%c0_57, %c24_58], %108 {strides = array<i32>} : memref<8x32xbf16, #tpu.memory_space<vmem>>, vector<8x8xbf16>,
    %c0_59 = arith.constant 0 : index
    %c0_60 = arith.constant 0 : index
    %110 = vector.load %arg7[%c0_59, %c0_60] : memref<8x32xbf16, #tpu.memory_space<vmem>>, vector<8x32xbf16>
    %c0_61 = arith.constant 0 : index
    %c0_62 = arith.constant 0 : index
    %111 = vector.load %arg4[%c0_61, %c0_62] : memref<32x32xbf16, #tpu.memory_space<vmem>>, vector<32x32xbf16>
    %cst_63 = arith.constant dense<0.000000e+00> : vector<8x32xf32>
    %112 = tpu.matmul %110, %111, %cst_63 {dimension_numbers = #tpu.dot_dimension_numbers<[1], [0], [0], [1], [0, 0, 1, 1], [], []>} : vector<8x32xbf16>, vector<32x32xbf16>, vector<8x32xf32> -> vector<8x32xf32>
    %c0_64 = arith.constant 0 : index
    %c0_65 = arith.constant 0 : index
    %c0_66 = arith.constant 0 : index
    %113 = vector.load %arg5[%c0_64, %c0_65, %c0_66] : memref<1x8x32xbf16, #tpu.memory_space<vmem>>, vector<1x8x32xbf16>
    %114 = vector.shape_cast %113 : vector<1x8x32xbf16> to vector<8x32xbf16>
    %115 = arith.extf %114 : vector<8x32xbf16> to vector<8x32xf32>
    %116 = arith.addf %115, %112 : vector<8x32xf32>
    %117 = arith.truncf %116 : vector<8x32xf32> to vector<8x32xbf16>
    %c0_67 = arith.constant 0 : index
    %c0_68 = arith.constant 0 : index
    %c0_69 = arith.constant 0 : index
    %118 = vector.load %arg6[%c0_67, %c0_68, %c0_69] : memref<1x8x32xbf16, #tpu.memory_space<vmem>>, vector<1x8x32xbf16>
    %119 = vector.shape_cast %118 : vector<1x8x32xbf16> to vector<8x32xbf16>
    %120 = vector.shape_cast %117 : vector<8x32xbf16> to vector<1x8x32xbf16>
    tpu.vector_store %arg6[%c0_67, %c0_68, %c0_69], %120 {strides = array<i32>} : memref<1x8x32xbf16, #tpu.memory_space<vmem>>, vector<1x8x32xbf16>,
    return
  }
  func.func @transform_0(%arg0: i32) -> (i32, i32, i32) {
    %c0_i32 = arith.constant 0 : i32
    %c0_i32_0 = arith.constant 0 : i32
    %c0_i32_1 = arith.constant 0 : i32
    return %arg0, %c0_i32, %c0_i32_0 : i32, i32, i32
  }
  func.func @transform_1(%arg0: i32) -> (i32, i32, i32) {
    %c0_i32 = arith.constant 0 : i32
    %c0_i32_0 = arith.constant 0 : i32
    %c0_i32_1 = arith.constant 0 : i32
    %c0_i32_2 = arith.constant 0 : i32
    return %c0_i32, %c0_i32_0, %c0_i32_1 : i32, i32, i32
  }
  func.func @transform_2(%arg0: i32) -> (i32, i32, i32) {
    %c0_i32 = arith.constant 0 : i32
    %c0_i32_0 = arith.constant 0 : i32
    %c0_i32_1 = arith.constant 0 : i32
    return %arg0, %c0_i32, %c0_i32_0 : i32, i32, i32
  }
  func.func @transform_3(%arg0: i32) -> (i32, i32) {
    %c0_i32 = arith.constant 0 : i32
    %c0_i32_0 = arith.constant 0 : i32
    %c0_i32_1 = arith.constant 0 : i32
    return %c0_i32, %c0_i32_0 : i32, i32
  }
  func.func @transform_4(%arg0: i32) -> (i32, i32, i32) {
    %c0_i32 = arith.constant 0 : i32
    %c0_i32_0 = arith.constant 0 : i32
    %c0_i32_1 = arith.constant 0 : i32
    return %arg0, %c0_i32, %c0_i32_0 : i32, i32, i32
  }
  func.func @transform_5(%arg0: i32) -> (i32, i32, i32) {
    %c0_i32 = arith.constant 0 : i32
    %c0_i32_0 = arith.constant 0 : i32
    %c0_i32_1 = arith.constant 0 : i32
    return %arg0, %c0_i32, %c0_i32_0 : i32, i32, i32
  }
}

module attributes {stable_mosaic.version = 11 : i64} {
  func.func @_rmsnorm_gated_ffn_kernel(%arg0: i32, %arg1: memref<16x32xbf16, #tpu.memory_space<vmem>>, %arg2: memref<1x32xf32, #tpu.memory_space<vmem>>, %arg3: memref<32x64xbf16, #tpu.memory_space<vmem>>, %arg4: memref<32x64xbf16, #tpu.memory_space<vmem>>, %arg5: memref<64x32xbf16, #tpu.memory_space<vmem>>, %arg6: memref<16x32xbf16, #tpu.memory_space<vmem>>) attributes {dimension_semantics = [#tpu.dimension_semantics<parallel>], iteration_bounds = array<i64: 1>, scalar_prefetch = 0 : i64, scratch_operands = 0 : i64, tpu.core_type = #tpu.core_type<tc>, window_params = [{transform_indices = @transform_0, window_bounds = array<i64: 16, 32>}, {pipeline_mode = #tpu.pipeline_mode<synchronous>, transform_indices = @transform_1, window_bounds = array<i64: 1, 32>}, {pipeline_mode = #tpu.pipeline_mode<synchronous>, transform_indices = @transform_2, window_bounds = array<i64: 32, 64>}, {pipeline_mode = #tpu.pipeline_mode<synchronous>, transform_indices = @transform_3, window_bounds = array<i64: 32, 64>}, {pipeline_mode = #tpu.pipeline_mode<synchronous>, transform_indices = @transform_4, window_bounds = array<i64: 64, 32>}, {transform_indices = @transform_5, window_bounds = array<i64: 16, 32>}]} {
    %c0 = arith.constant 0 : index
    %c0_0 = arith.constant 0 : index
    %0 = vector.load %arg1[%c0, %c0_0] : memref<16x32xbf16, #tpu.memory_space<vmem>>, vector<16x32xbf16>
    %1 = arith.extf %0 : vector<16x32xbf16> to vector<16x32xf32>
    %2 = arith.mulf %1, %1 : vector<16x32xf32>
    %cst = arith.constant dense<0.000000e+00> : vector<16xf32>
    %3 = vector.multi_reduction <add>, %2, %cst [1] : vector<16x32xf32> to vector<16xf32>
    %4 = vector.shape_cast %3 : vector<16xf32> to vector<16x1xf32>
    %cst_1 = arith.constant 3.200000e+01 : f32
    %5 = vector.broadcast %cst_1 : f32 to vector<16x1xf32>
    %6 = arith.divf %4, %5 : vector<16x1xf32>
    %cst_2 = arith.constant 9.99999997E-7 : f32
    %7 = vector.broadcast %cst_2 : f32 to vector<16x1xf32>
    %8 = arith.addf %6, %7 : vector<16x1xf32>
    %9 = math.rsqrt %8 : vector<16x1xf32>
    %10 = vector.broadcast %9 : vector<16x1xf32> to vector<16x32xf32>
    %11 = arith.mulf %1, %10 : vector<16x32xf32>
    %c0_3 = arith.constant 0 : index
    %c0_4 = arith.constant 0 : index
    %12 = vector.load %arg2[%c0_3, %c0_4] : memref<1x32xf32, #tpu.memory_space<vmem>>, vector<1x32xf32>
    %13 = vector.broadcast %12 : vector<1x32xf32> to vector<16x32xf32>
    %14 = arith.mulf %11, %13 : vector<16x32xf32>
    %15 = arith.truncf %14 : vector<16x32xf32> to vector<16x32xbf16>
    %c0_5 = arith.constant 0 : index
    %c0_6 = arith.constant 0 : index
    %16 = vector.load %arg3[%c0_5, %c0_6] : memref<32x64xbf16, #tpu.memory_space<vmem>>, vector<32x64xbf16>
    %cst_7 = arith.constant dense<0.000000e+00> : vector<16x64xf32>
    %17 = tpu.matmul %15, %16, %cst_7 {dimension_numbers = #tpu.dot_dimension_numbers<[1], [0], [0], [1], [0, 0, 1, 1], [], []>} : vector<16x32xbf16>, vector<32x64xbf16>, vector<16x64xf32> -> vector<16x64xf32>
    %18 = arith.mulf %17, %17 : vector<16x64xf32>
    %19 = arith.mulf %17, %18 : vector<16x64xf32>
    %cst_8 = arith.constant 4.471500e-02 : f32
    %20 = vector.broadcast %cst_8 : f32 to vector<16x64xf32>
    %21 = arith.mulf %20, %19 : vector<16x64xf32>
    %22 = arith.addf %17, %21 : vector<16x64xf32>
    %cst_9 = arith.constant 0.797884583 : f32
    %23 = vector.broadcast %cst_9 : f32 to vector<16x64xf32>
    %24 = arith.mulf %23, %22 : vector<16x64xf32>
    %25 = math.tanh %24 : vector<16x64xf32>
    %cst_10 = arith.constant 1.000000e+00 : f32
    %26 = vector.broadcast %cst_10 : f32 to vector<16x64xf32>
    %27 = arith.addf %26, %25 : vector<16x64xf32>
    %cst_11 = arith.constant 5.000000e-01 : f32
    %28 = vector.broadcast %cst_11 : f32 to vector<16x64xf32>
    %29 = arith.mulf %28, %27 : vector<16x64xf32>
    %30 = arith.mulf %17, %29 : vector<16x64xf32>
    %c0_12 = arith.constant 0 : index
    %c0_13 = arith.constant 0 : index
    %31 = vector.load %arg4[%c0_12, %c0_13] : memref<32x64xbf16, #tpu.memory_space<vmem>>, vector<32x64xbf16>
    %cst_14 = arith.constant dense<0.000000e+00> : vector<16x64xf32>
    %32 = tpu.matmul %15, %31, %cst_14 {dimension_numbers = #tpu.dot_dimension_numbers<[1], [0], [0], [1], [0, 0, 1, 1], [], []>} : vector<16x32xbf16>, vector<32x64xbf16>, vector<16x64xf32> -> vector<16x64xf32>
    %33 = arith.mulf %30, %32 : vector<16x64xf32>
    %34 = arith.truncf %33 : vector<16x64xf32> to vector<16x64xbf16>
    %c0_15 = arith.constant 0 : index
    %c0_16 = arith.constant 0 : index
    %35 = vector.load %arg5[%c0_15, %c0_16] : memref<64x32xbf16, #tpu.memory_space<vmem>>, vector<64x32xbf16>
    %cst_17 = arith.constant dense<0.000000e+00> : vector<16x32xf32>
    %36 = tpu.matmul %34, %35, %cst_17 {dimension_numbers = #tpu.dot_dimension_numbers<[1], [0], [0], [1], [0, 0, 1, 1], [], []>} : vector<16x64xbf16>, vector<64x32xbf16>, vector<16x32xf32> -> vector<16x32xf32>
    %37 = arith.addf %1, %36 : vector<16x32xf32>
    %38 = arith.truncf %37 : vector<16x32xf32> to vector<16x32xbf16>
    %c0_18 = arith.constant 0 : index
    %c0_19 = arith.constant 0 : index
    %39 = vector.load %arg6[%c0_18, %c0_19] : memref<16x32xbf16, #tpu.memory_space<vmem>>, vector<16x32xbf16>
    tpu.vector_store %arg6[%c0_18, %c0_19], %38 {strides = array<i32>} : memref<16x32xbf16, #tpu.memory_space<vmem>>, vector<16x32xbf16>,
    return
  }
  func.func @transform_0(%arg0: i32) -> (i32, i32) {
    %c0_i32 = arith.constant 0 : i32
    %c0_i32_0 = arith.constant 0 : i32
    return %arg0, %c0_i32 : i32, i32
  }
  func.func @transform_1(%arg0: i32) -> (i32, i32) {
    %c0_i32 = arith.constant 0 : i32
    %c0_i32_0 = arith.constant 0 : i32
    %c0_i32_1 = arith.constant 0 : i32
    return %c0_i32, %c0_i32_0 : i32, i32
  }
  func.func @transform_2(%arg0: i32) -> (i32, i32) {
    %c0_i32 = arith.constant 0 : i32
    %c0_i32_0 = arith.constant 0 : i32
    %c0_i32_1 = arith.constant 0 : i32
    return %c0_i32, %c0_i32_0 : i32, i32
  }
  func.func @transform_3(%arg0: i32) -> (i32, i32) {
    %c0_i32 = arith.constant 0 : i32
    %c0_i32_0 = arith.constant 0 : i32
    %c0_i32_1 = arith.constant 0 : i32
    return %c0_i32, %c0_i32_0 : i32, i32
  }
  func.func @transform_4(%arg0: i32) -> (i32, i32) {
    %c0_i32 = arith.constant 0 : i32
    %c0_i32_0 = arith.constant 0 : i32
    %c0_i32_1 = arith.constant 0 : i32
    return %c0_i32, %c0_i32_0 : i32, i32
  }
  func.func @transform_5(%arg0: i32) -> (i32, i32) {
    %c0_i32 = arith.constant 0 : i32
    %c0_i32_0 = arith.constant 0 : i32
    return %arg0, %c0_i32 : i32, i32
  }
}

</mosaic_0001>

<bundles_post_ra>
// kernel: tpu_custom_call.1
= control target key start
LH: loop header
LB: loop body
LE: loop exit
PB: predicated region body
PF: predicated region fallthrough
CT: control target
= control target key end

     0   :  { %6 = vsyncpa [#allocation3], 0  ;;  %s481_s0 = inlined_call_operand.hbm [shape: f32[8,128], index: 0, kind: input, shape index: {}]   ;;  %s482_s1 = inlined_call_operand.hbm [shape: f32[16,128], index: 1, kind: output, shape index: {}]  }
   0x1   :  { %7 = vsyncpa [#allocation4], 0 }
   0x2   :  { %9 = vsyncpa [#allocation4 + $0x1], 0  ;;  %s351_s6 = smov 0   ;;  %s353_s7 = smov 0  }
   0x3   :  { %s355_s8 = smov 0   ;;  %s357_s9 = smov 0  }
   0x4 LB: > { %s372_s10 = sadd.s32 4294967295, %s337_s9   ;;  %s183_s11 = sadd.s32 4294967294, %s337_s9   ;;  %s337_s9 = sphi %s357_s9, %s498_s9   ;;  %s333_s8 = sphi %s355_s8, %s497_s8   ;;  %s329_s7 = sphi %s353_s7, %s496_s7   ;;  %s325_s6 = sphi %s351_s6, %s495_s6  }
   0x5   : > { %s376_s12 = sadd.s32 1, %s337_s9   ;;  %s43_s13 = sadd.s32 1, %s333_s8 }
   0x6   : > { %s40_s14 = ssub.s32 %s337_s9, %s376_s12  ;;  %p53_p0 = scmp.ne.s32.totalorder %s333_s8, %s329_s7 }
   0x7   : > { %p41_p1 = scmp.eq.s32.totalorder %s40_s14, 0  ;;  %p54_p2 = scmp.eq.s32.totalorder %s372_s10, 1 }
   0x8   : > { %p59_p3 = scmp.ne.s32.totalorder %s329_s7, %s325_s6  ;;  %p60_p4 = scmp.eq.s32.totalorder %s183_s11, 1 }
   0x9   : > { %s387_s15 = scalar_select %p41_p1, %s333_s8, %s43_s13  }
   0xa   : > { %p389_p5 = por %p54_p2, %p53_p0  ;;  %p393_p6 = por %p60_p4, %p59_p3 }
   0xb   : > { %p184_p7 = scmp.ge.s32.totalorder %s337_s9, 1  ;;  %p67_p8 = scmp.lt.s32.totalorder %s337_s9, 3 }
   0xc   : > { %s486_s16 = scalar_select %p389_p5, 1, 0 }
   0xd   : > { %s487_s17 = scalar_select %p393_p6, 1, 0 }
   0xe   : > { %p483_p9 = scmp.eq.s32.totalorder %s372_s10, 0  ;;  %p400_p10 = pnand %p184_p7, %p67_p8 }
   0xf   : > { %s339_s19 = smov [#allocation2]   ;;  %s243_s24 = scalar_lea.hbm %s481_s0, 128 }
  0x10   : > { %s488_s18 = scalar_select %p400_p10, 1, 0 }
  0x11   : > { %s80_s20 = sshll.u32 %s339_s19, 4  ;;  %p199_p11 = pneg %p400_p10  ;;  %s81_s20 = int_to_ptr.vmem [resolvable:$true] %s80_s20 }
  0x12   : > { %p244_p13 = scmp.ne.s32.totalorder %s481_s0, %s243_s24  ;;  %p250_p3 = scmp.lt.u32.totalorder %s243_s24, %s481_s0 }
  0x13   : > { %p408_p12 = pnand %p483_p9, %p199_p11 }
  0x15   : > { %p245_p0 = pneg %p408_p12 }
  0x17   : > { %p246_p1 = pnand %p245_p0, %p244_p13 }
  0x19   : > { %p247_p2 = pneg %p246_p1 }
  0x1b   : > { %p252_p4 = pnand %p250_p3, %p247_p2 }
  0x1d   : > { %255 = shalt.err (!%p252_p4)
}
  0x1e   : > { %s256_s29 = scalar_lea.vmem %s81_s20, 128  ;;  %p264_p9 = scmp.lt.s32.totalorder %s81_s20, %s81_s20 }
  0x1f   : > { %p257_p7 = scmp.ne.s32.totalorder %s81_s20, %s256_s29  ;;  %p265_p6 = scmp.lt.s32.totalorder %s256_s29, %s256_s29 }
  0x21   : > { %p259_p8 = pnand %p257_p7, %p245_p0  ;;  %p266_p5 = por %p265_p6, %p264_p9 }
  0x23   : > { %p260_p11 = pneg %p259_p8 }
  0x25   : > { %p267_p10 = pnand %p266_p5, %p260_p11 }
  0x27   : > { %270 = shalt.err (!%p267_p10)
}
  0x28   : > { %202 = dma.hbm_to_vmem [thread:$0]  (!%p408_p12), %s481_s0, 128, %s81_s20, [#allocation3]  }
  0x29   : > { %p490_p13 = scmp.ne.s32.totalorder %s488_s18, 0 }
  0x2a   : > { %p491_p1 = scmp.eq.s32.totalorder (!%p490_p13), %s372_s10, 0 }
  0x2b   : > { %93 = sbr.rel (%p490_p13) target bundleno = 77 (0x4d), region = 24 }
  0x32   : > { %316 = dma.done.wait (%p491_p1), [#allocation3], 128   ;;  %p492_p0 = pmov %p491_p1 }
  0x33   : > { %s105_s3 = sand.u32 1, %s329_s7   ;;  %s190_s13 = sshll.u32 %s372_s10, 7  ;;  %v108_v0 = vld [vmem:[#allocation2] sm:$0xff] }
  0x34   : > { %318 = vsyncadd (%p492_p0), [#allocation3], 4294967168  ;;  %s188_s4 = sshll.u32 %s105_s3, 3  ;;  %s441_s18 = scalar_lea.hbm %s482_s1, %s190_s13 }
  0x35   : > { %s107_s5 = scalar_lea.vmem [#allocation5], %s188_s4  ;;  %s111_s20 = scalar_lea.sflag [#allocation4], %s105_s3 }
  0x36   : > { %s124_s11 = sshll.u32 %s107_s5, 4  ;;  %109 = vst [vmem:[%s107_s5] sm:$0xff] %v108_v0  ;;  %p493_p6 = scmp.ne.s32.totalorder %s486_s16, 0  ;;  %s436_s11 = int_to_ptr.vmem [resolvable:$true] %s124_s11 }
  0x37   : > { %s271_s21 = scalar_lea.vmem %s436_s11, 128  ;;  %s340_s22 = smov [#allocation5]  }
  0x38   : > { %p272_p5 = scmp.ne.s32.totalorder %s436_s11, %s271_s21  ;;  %s275_s10 = sshll.u32 %s340_s22, 4  ;;  %s276_s10 = int_to_ptr.vmem [resolvable:$false] %s275_s10 }
  0x39   : > { %s277_s23 = scalar_lea.vmem %s276_s10, 256  ;;  %p278_p12 = scmp.lt.s32.totalorder %s436_s11, %s276_s10 }
  0x3a   : > { %p273_p9 = pnand %p272_p5, %p493_p6  ;;  %p279_p2 = scmp.lt.s32.totalorder %s277_s23, %s271_s21 }
  0x3c   : > { %p274_p10 = pneg %p273_p9  ;;  %p280_p3 = por %p279_p2, %p278_p12 }
  0x3e   : > { %p281_p4 = pnand %p280_p3, %p274_p10 }
  0x40   : > { %284 = shalt.err (!%p281_p4)
}
  0x41   : > { %s285_s24 = scalar_lea.hbm %s441_s18, 128  ;;  %s289_s27 = scalar_lea.hbm %s482_s1, 256 }
  0x42   : > { %p286_p7 = scmp.ne.s32.totalorder %s441_s18, %s285_s24  ;;  %p290_p13 = scmp.lt.u32.totalorder %s441_s18, %s482_s1 }
  0x43   : > { %p291_p1 = scmp.lt.u32.totalorder %s289_s27, %s285_s24  ;;  %p293_p5 = scmp.lt.u32.totalorder %s285_s24, %s441_s18 }
  0x44   : > { %p287_p8 = pnand %p286_p7, %p493_p6 }
  0x45   : > { %p292_p0 = por %p291_p1, %p290_p13 }
  0x46   : > { %p288_p11 = pneg %p287_p8 }
  0x47   : > { %p294_p9 = por %p293_p5, %p292_p0 }
  0x49   : > { %p295_p10 = pnand %p294_p9, %p288_p11 }
  0x4b   : > { %298 = shalt.err (!%p295_p10)
}
  0x4c   : > { %197 = dma.vmem_to_hbm [thread:$0]  (%p493_p6), %s436_s11, 128, %s441_s18, %s111_s20  }
  0x4d PF: > { %p209_p12 = scmp.ge.s32.totalorder %s337_s9, 2  ;;  %s136_s30 = sand.u32 1, %s325_s6  }
  0x4e   : > { %p494_p2 = scmp.ne.s32.totalorder %s487_s17, 0  ;;  %s137_s2 = scalar_lea.sflag [#allocation4], %s136_s30 }
  0x50   : > { %p204_p3 = pnand %p209_p12, %p494_p2 }
  0x52   : > { %320 = dma.done.wait (!%p204_p3), %s137_s2, 128  }
  0x53   : > { %322 = vsyncadd (!%p204_p3), %s137_s2, 4294967168  ;;  %p12_p4 = scmp.ge.s32.totalorder %s376_s12, 4   ;;  %s495_s6 = smov %s329_s7 }
  0x54   : > { %s496_s7 = smov %s333_s8  ;;  %s497_s8 = smov %s387_s15 }
  0x55   : > { %s498_s9 = smov %s376_s12  ;;  %14 = sbr.rel (!%p12_p4) target bundleno = 4 (0x4), region = 61 }
  0x5c   :  { %142 = vsyncpa [#allocation3], 1 }
  0x5d   :  { %144 = vsyncpa [#allocation3 + $0x1], 1 }
  0x5e   :  { %145 = vsyncpa [#allocation4], 1 }
  0x5f   :  { %147 = vsyncpa [#allocation4 + $0x1], 1 }

// kernel: mgen_encoder_forward.13
= control target key start
LH: loop header
LB: loop body
LE: loop exit
PB: predicated region body
PF: predicated region fallthrough
CT: control target
= control target key end

     0   :  { %7 = vsyncpa [#allocation3], 0  ;;  %s239_s0 = inlined_call_operand.hbm [shape: bf16[16,32], index: 0, kind: input, shape index: {}]   ;;  %s240_s1 = inlined_call_operand.hbm [shape: f32[1,32], index: 1, kind: input, shape index: {}]   ;;  %s241_s2 = inlined_call_operand.hbm [shape: f32[16,32], index: 2, kind: output, shape index: {}]  }
   0x1   :  { %8 = vsyncpa [#allocation6], 0 }
   0x2   :  { %9 = vsyncpa [#allocation4], 0  ;;  %s177_s9 = smov [#allocation2]   ;;  %s105_s13 = scalar_lea.hbm %s239_s0, 128 }
   0x3   :  { %s15_s10 = sshll.u32 %s177_s9, 4  ;;  %p106_p0 = scmp.ne.s32.totalorder %s239_s0, %s105_s13  ;;  %s16_s10 = int_to_ptr.vmem [resolvable:$true] %s15_s10 }
   0x4   :  { %p109_p1 = scmp.lt.u32.totalorder %s105_s13, %s239_s0 }
   0x6   :  { %p111_p2 = pnand %p109_p1, %p106_p0 }
   0x8   :  { %114 = shalt.err (!%p111_p2)
}
   0x9   :  { %s115_s18 = scalar_lea.vmem %s16_s10, 128  ;;  %p120_p4 = scmp.lt.s32.totalorder %s16_s10, %s16_s10 }
   0xa   :  { %p116_p3 = scmp.ne.s32.totalorder %s16_s10, %s115_s18  ;;  %p121_p5 = scmp.lt.s32.totalorder %s115_s18, %s115_s18 }
   0xc   :  { %p122_p6 = por %p121_p5, %p120_p4 }
   0xe   :  { %p123_p7 = pnand %p122_p6, %p116_p3 }
  0x10   :  { %126 = shalt.err (!%p123_p7)
}
  0x11   :  { %s178_s19 = smov 64   ;;  %s179_s20 = smov 4  }
  0x12   :  { %21 = dma.hbm_to_vmem [thread:$0]  %s239_s0, 128, %s16_s10, [#allocation3], %s178_s19, %s178_s19, %s179_s20  }
  0x13   :  { %s180_s23 = smov [#allocation5]   ;;  %s127_s27 = scalar_lea.hbm %s240_s1, 16 }
  0x14   :  { %s28_s24 = sshll.u32 %s180_s23, 4  ;;  %p128_p8 = scmp.ne.s32.totalorder %s240_s1, %s127_s27  ;;  %s29_s24 = int_to_ptr.vmem [resolvable:$true] %s28_s24 }
  0x15   :  { %p131_p9 = scmp.lt.u32.totalorder %s127_s27, %s240_s1 }
  0x17   :  { %p133_p10 = pnand %p131_p9, %p128_p8 }
  0x19   :  { %136 = shalt.err (!%p133_p10)
}
  0x1a   :  { %s137_s4 = scalar_lea.vmem %s29_s24, 16  ;;  %s141_s0 = scalar_lea.vmem %s29_s24, 32 }
  0x1b   :  { %p138_p11 = scmp.ne.s32.totalorder %s29_s24, %s137_s4  ;;  %p142_p12 = scmp.lt.s32.totalorder %s29_s24, %s29_s24 }
  0x1c   :  { %p143_p13 = scmp.lt.s32.totalorder %s141_s0, %s137_s4 }
  0x1e   :  { %p144_p0 = por %p143_p13, %p142_p12 }
  0x20   :  { %p145_p1 = pnand %p144_p0, %p138_p11 }
  0x22   :  { %148 = shalt.err (!%p145_p1)
}
  0x23   :  { %31 = dma.hbm_to_vmem [thread:$0]  %s240_s1, 16, %s29_s24, [#allocation6]  }
  0x24   :  { %171 = dma.done.wait [#allocation3], 128  }
  0x25   :  { %172 = vsyncadd [#allocation3], 4294967168 }
  0x26   :  { %173 = dma.done.wait [#allocation6], 16  }
  0x27   :  { %174 = vsyncadd [#allocation6], 4294967280  ;;  %v91_v0 = vld [vmem:[#allocation2] sm:$0xff]   ;;  %vm44_vm0 = vcmask 261120   ;;  %v89_v14 = vld [vmem:[#allocation5] ss:$0 sm:$0xff] }
  0x28   :  { %v92_v1 = vunpack.c.l.bf16 %v91_v0  ;;  %v93_v2 = vunpack.c.h.bf16 %v91_v0  ;;  %s181_s1 = smov [#allocation7]  }
  0x29   :  { %s76_s7 = sshll.u32 %s181_s1, 4  ;;  %s77_s7 = int_to_ptr.vmem [resolvable:$true] %s76_s7 }
  0x2a   :  { %v42_v3 = vmul.f32 %v92_v1, %v92_v1  ;;  %v43_v4 = vmul.f32 %v93_v2, %v93_v2  ;;  %s149_s8 = scalar_lea.vmem %s77_s7, 256  ;;  %p154_p3 = scmp.lt.s32.totalorder %s77_s7, %s77_s7 }
  0x2b   :  { %p150_p2 = scmp.ne.s32.totalorder %s77_s7, %s149_s8  ;;  %p155_p4 = scmp.lt.s32.totalorder %s149_s8, %s149_s8 }
  0x2c   :  { %v45_v5 = vsel %vm44_vm0, %v42_v3, 0.0  ;;  %v48_v6 = vsel %vm44_vm0, %v43_v4, 0.0 }
  0x2d   :  { %46 = vadd.xlane.f32.xlu0 %v45_v5  ;;  %p156_p5 = por %p155_p4, %p154_p3 }
  0x2f   :  { %p157_p6 = pnand %p156_p5, %p150_p2 }
  0x31   :  { %49 = vadd.xlane.f32.xlu0 %v48_v6 }
  0xba   :  { %v47_v7 = vpop.xlane.xlu0 %46 }
  0xbb   :  { %v52_v8 = vmul.f32 0.03125, %v47_v7 }
  0xbd   :  { %v54_v9 = vadd.f32 1e-06, %v52_v8 }
  0xbe   :  { %v50_v10 = vpop.xlane.xlu0 %49 }
  0xbf   :  { %101 = vrsqrt.f32 %v54_v9  ;;  %v53_v11 = vmul.f32 0.03125, %v50_v10 }
  0xc1   :  { %v55_v12 = vadd.f32 1e-06, %v53_v11 }
  0xc3   :  { %103 = vrsqrt.f32 %v55_v12 }
  0xc9   :  { %v102_v13 = vpop.eup %101 }
  0xca   :  { %v58_v15 = vmul.f32 %v102_v13, %v92_v1 }
  0xcc   :  { %v67_v16 = vmul.f32 %v89_v14, %v58_v15 }
  0xcd   :  { %v104_v17 = vpop.eup %103 }
  0xce   :  { %v59_v18 = vmul.f32 %v104_v17, %v93_v2  ;;  %69 = vst.msk [vmem:[#allocation7] sm:$0xff] %vm44_vm0, %v67_v16 }
  0xd0   :  { %v68_v19 = vmul.f32 %v89_v14, %v59_v18 }
  0xd2   :  { %70 = vst.msk [vmem:[#allocation7 + $0x8] sm:$0xff] %vm44_vm0, %v68_v19 }
  0xd3   :  { %160 = shalt.err (!%p157_p6)
}
  0xd4   :  { %s161_s11 = scalar_lea.hbm %s241_s2, 256 }
  0xd5   :  { %p162_p7 = scmp.ne.s32.totalorder %s241_s2, %s161_s11  ;;  %p165_p8 = scmp.lt.u32.totalorder %s161_s11, %s241_s2 }
  0xd7   :  { %p167_p9 = pnand %p165_p8, %p162_p7 }
  0xd9   :  { %170 = shalt.err (!%p167_p9)
}
  0xda   :  { %s182_s16 = smov 128   ;;  %s183_s17 = smov 8  }
  0xdb   :  { %82 = dma.vmem_to_hbm [thread:$0]  %s77_s7, 256, %s241_s2, [#allocation4], %s182_s16, %s182_s16, %s183_s17  }
  0xdc   :  { %175 = dma.done.wait [#allocation4], 256  }
  0xdd   :  { %176 = vsyncadd [#allocation4], 4294967040 }
  0xde   :  { %86 = vsyncpa [#allocation3], 1 }
  0xdf   :  { %87 = vsyncpa [#allocation6], 1 }
  0xe0   :  { %88 = vsyncpa [#allocation4], 1 }

// kernel: mgen_encoder_forward.7
= control target key start
LH: loop header
LB: loop body
LE: loop exit
PB: predicated region body
PF: predicated region fallthrough
CT: control target
= control target key end

     0   :  { %8 = vsyncpa [#allocation3], 0  ;;  %s402_s0 = inlined_call_operand.hbm [shape: bf16[16,32], index: 0, kind: input, shape index: {}]   ;;  %s403_s1 = inlined_call_operand.hbm [shape: f32[1,32], index: 1, kind: input, shape index: {}]   ;;  %s404_s2 = inlined_call_operand.hbm [shape: bf16[32,96], index: 2, kind: input, shape index: {}]   ;;  %s405_s3 = inlined_call_operand.hbm [shape: bf16[16,96], index: 3, kind: output, shape index: {}]  }
   0x1   :  { %9 = vsyncpa [#allocation6], 0 }
   0x2   :  { %10 = vsyncpa [#allocation4], 0  ;;  %s307_s12 = smov [#allocation5]   ;;  %s308_s14 = smov [#allocation2]  }
   0x3   :  { %s29_s13 = sshll.u32 %s307_s12, 4  ;;  %s16_s15 = sshll.u32 %s308_s14, 4  ;;  %s30_s13 = int_to_ptr.vmem [resolvable:$true] %s29_s13  ;;  %s335_s15 = int_to_ptr.vmem [resolvable:$true] %s16_s15 }
   0x4   :  { %s213_s18 = scalar_lea.hbm %s403_s1, 16 }
   0x5   :  { %p214_p0 = scmp.ne.s32.totalorder %s403_s1, %s213_s18  ;;  %p217_p1 = scmp.lt.u32.totalorder %s213_s18, %s403_s1 }
   0x7   :  { %p219_p2 = pnand %p217_p1, %p214_p0 }
   0x9   :  { %222 = shalt.err (!%p219_p2)
}
   0xa   :  { %s223_s23 = scalar_lea.vmem %s30_s13, 16  ;;  %s227_s24 = scalar_lea.vmem %s30_s13, 32 }
   0xb   :  { %p224_p3 = scmp.ne.s32.totalorder %s30_s13, %s223_s23  ;;  %p228_p4 = scmp.lt.s32.totalorder %s30_s13, %s30_s13 }
   0xc   :  { %p229_p5 = scmp.lt.s32.totalorder %s227_s24, %s223_s23 }
   0xe   :  { %p230_p6 = por %p229_p5, %p228_p4 }
  0x10   :  { %p231_p7 = pnand %p230_p6, %p224_p3 }
  0x12   :  { %234 = shalt.err (!%p231_p7)
}
  0x13   :  { %32 = dma.hbm_to_vmem [thread:$0]  %s403_s1, 16, %s30_s13, [#allocation6]  }
  0x14   :  { %s235_s29 = scalar_lea.hbm %s402_s0, 128 }
  0x15   :  { %p236_p8 = scmp.ne.s32.totalorder %s402_s0, %s235_s29  ;;  %p239_p9 = scmp.lt.u32.totalorder %s235_s29, %s402_s0 }
  0x17   :  { %p241_p10 = pnand %p239_p9, %p236_p8 }
  0x19   :  { %244 = shalt.err (!%p241_p10)
}
  0x1a   :  { %s245_s7 = scalar_lea.vmem %s335_s15, 128  ;;  %p250_p12 = scmp.lt.s32.totalorder %s335_s15, %s335_s15 }
  0x1b   :  { %p246_p11 = scmp.ne.s32.totalorder %s335_s15, %s245_s7  ;;  %p251_p13 = scmp.lt.s32.totalorder %s245_s7, %s245_s7 }
  0x1d   :  { %p252_p0 = por %p251_p13, %p250_p12 }
  0x1f   :  { %p253_p1 = pnand %p252_p0, %p246_p11 }
  0x21   :  { %256 = shalt.err (!%p253_p1)
}
  0x22   :  { %s309_s1 = smov 64   ;;  %s310_s8 = smov 4  }
  0x23   :  { %22 = dma.hbm_to_vmem [thread:$0]  %s402_s0, 128, %s335_s15, [#allocation3], %s309_s1, %s309_s1, %s310_s8  }
  0x24   :  { %s311_s11 = smov [#allocation7]   ;;  %s257_s16 = scalar_lea.hbm %s404_s2, 256 }
  0x25   :  { %s38_s12 = sshll.u32 %s311_s11, 4  ;;  %p258_p2 = scmp.ne.s32.totalorder %s404_s2, %s257_s16  ;;  %s39_s12 = int_to_ptr.vmem [resolvable:$true] %s38_s12 }
  0x26   :  { %p261_p3 = scmp.lt.u32.totalorder %s257_s16, %s404_s2 }
  0x28   :  { %p263_p4 = pnand %p261_p3, %p258_p2 }
  0x2a   :  { %266 = shalt.err (!%p263_p4)
}
  0x2b   :  { %s267_s21 = scalar_lea.vmem %s39_s12, 256  ;;  %p272_p6 = scmp.lt.s32.totalorder %s39_s12, %s39_s12 }
  0x2c   :  { %p268_p5 = scmp.ne.s32.totalorder %s39_s12, %s267_s21  ;;  %p273_p7 = scmp.lt.s32.totalorder %s267_s21, %s267_s21 }
  0x2e   :  { %p274_p8 = por %p273_p7, %p272_p6 }
  0x30   :  { %p275_p9 = pnand %p274_p8, %p268_p5 }
  0x32   :  { %278 = shalt.err (!%p275_p9)
}
  0x33   :  { %44 = dma.hbm_to_vmem [thread:$0]  %s404_s2, 256, %s39_s12, [#allocation6], %s309_s1, %s309_s1, %s310_s8  }
  0x34   :  { %301 = dma.done.wait [#allocation3], 128  }
  0x35   :  { %302 = vsyncadd [#allocation3], 4294967168 }
  0x36   :  { %303 = dma.done.wait [#allocation6], 272  }
  0x37   :  { %304 = vsyncadd [#allocation6], 4294967024  ;;  %v185_v0 = vld [vmem:[#allocation2] sm:$0xff]   ;;  %vm61_vm0 = vcmask 261120   ;;  %v207_v7 = vld [vmem:[#allocation7] sm:$0xff]   ;;  %v312_v8 = vmov 0.0  }
  0x38   :  { %v186_v1 = vunpack.c.l.bf16 %v185_v0  ;;  %v187_v2 = vunpack.c.h.bf16 %v185_v0  ;;  %191 = vmatprep.subr.bf16.mxu0 %v312_v8  ;;  %vm313_vm1 = vmmov 0   ;;  %v208_v9 = vld [vmem:[#allocation7 + $0x8] sm:$0xff]   ;;  %v176_v19 = vld [vmem:[#allocation5] ss:$0 sm:$0xff]  ;;  %vm155_vm2 = vcmask 781312   ;;  %s314_s2 = smov [#allocation8]  }
  0x39   :  { %195 = vmatprep.mubr.msk.bf16.mxu0 %vm313_vm1, %v312_v8  ;;  %192 = vmatpush3.bf16.msra.mxu0 %v207_v7  ;;  %s163_s22 = sshll.u32 %s314_s2, 4  ;;  %s164_s22 = int_to_ptr.vmem [resolvable:$true] %s163_s22 }
  0x3a   :  { %v59_v3 = vmul.f32 %v186_v1, %v186_v1  ;;  %v60_v4 = vmul.f32 %v187_v2, %v187_v2  ;;  %193 = vmatprep.subr.bf16.mxu0 %v312_v8  ;;  %s279_s23 = scalar_lea.vmem %s164_s22, 128  ;;  %p284_p11 = scmp.lt.s32.totalorder %s164_s22, %s164_s22 }
  0x3b   :  { %p280_p10 = scmp.ne.s32.totalorder %s164_s22, %s279_s23  ;;  %p285_p12 = scmp.lt.s32.totalorder %s279_s23, %s279_s23 }
  0x3c   :  { %v62_v5 = vsel %vm61_vm0, %v59_v3, 0.0  ;;  %v65_v6 = vsel %vm61_vm0, %v60_v4, 0.0 }
  0x3d   :  { %63 = vadd.xlane.f32.xlu0 %v62_v5  ;;  %194 = vmatpush3.bf16.msra.mxu0 %v208_v9  ;;  %p286_p13 = por %p285_p12, %p284_p11 }
  0x3f   :  { %p287_p0 = pnand %p286_p13, %p280_p10 }
  0x41   :  { %66 = vadd.xlane.f32.xlu0 %v65_v6 }
  0xca   :  { %v64_v10 = vpop.xlane.xlu0 %63 }
  0xcb   :  { %v69_v11 = vmul.f32 0.03125, %v64_v10 }
  0xcd   :  { %v71_v12 = vadd.f32 1e-06, %v69_v11 }
  0xce   :  { %v67_v13 = vpop.xlane.xlu0 %66 }
  0xcf   :  { %209 = vrsqrt.f32 %v71_v12  ;;  %v70_v14 = vmul.f32 0.03125, %v67_v13 }
  0xd1   :  { %v72_v15 = vadd.f32 1e-06, %v70_v14 }
  0xd3   :  { %211 = vrsqrt.f32 %v72_v15 }
  0xd9   :  { %v210_v16 = vpop.eup %209 }
  0xda   :  { %v75_v17 = vmul.f32 %v210_v16, %v186_v1 }
  0xdc   :  { %v84_v21 = vmul.f32 %v176_v19, %v75_v17 }
  0xdd   :  { %v212_v18 = vpop.eup %211 }
  0xde   :  { %v76_v20 = vmul.f32 %v212_v18, %v187_v2 }
  0xe0   :  { %v85_v22 = vmul.f32 %v176_v19, %v76_v20 }
  0xe2   :  { %v86_v23 = vpack.c.bf16 %v85_v22, %v84_v21 }
  0xe4   :  { %196 = vmatmul.mubr.msk.bf16.vlgmr.msra.gmra.mrb[0].mxu0 %vm61_vm0, %v86_v23 }
 0x1b7   :  { %v140_v24 = vpop.f32.mrb[0].mxu0 }
 0x1b8   :  { %v182_v25 = vpack.c.bf16 %v140_v24, %v140_v24  ;;  %v197_v26 = vpop.f32.mrb[1].mxu0 }
 0x1b9   :  { %v143_v27 = vpop.f32.mrb[2].mxu0 }
 0x1ba   :  { %v183_v28 = vpack.c.bf16 %v143_v27, %v143_v27  ;;  %v198_v29 = vpop.f32.mrb[3].mxu0  ;;  %156 = vst.msk [vmem:[#allocation8] sm:$0xf] %vm155_vm2, %v182_v25 }
 0x1bc   :  { %157 = vst.msk [vmem:[#allocation8 + $0x4] sm:$0xf] %vm155_vm2, %v183_v28 }
 0x1bd   :  { %290 = shalt.err (!%p287_p0)
}
 0x1be   :  { %s291_s26 = scalar_lea.hbm %s405_s3, 128 }
 0x1bf   :  { %p292_p1 = scmp.ne.s32.totalorder %s405_s3, %s291_s26  ;;  %p295_p2 = scmp.lt.u32.totalorder %s291_s26, %s405_s3 }
 0x1c1   :  { %p297_p3 = pnand %p295_p2, %p292_p1 }
 0x1c3   :  { %300 = shalt.err (!%p297_p3)
}
 0x1c4   :  { %169 = dma.vmem_to_hbm [thread:$0]  %s164_s22, 128, %s405_s3, [#allocation4], %s309_s1, %s309_s1, %s310_s8  }
 0x1c5   :  { %305 = dma.done.wait [#allocation4], 128  }
 0x1c6   :  { %306 = vsyncadd [#allocation4], 4294967168 }
 0x1c7   :  { %173 = vsyncpa [#allocation3], 1 }
 0x1c8   :  { %174 = vsyncpa [#allocation6], 1 }
 0x1c9   :  { %175 = vsyncpa [#allocation4], 1 }

// kernel: mgen_encoder_forward.9
= control target key start
LH: loop header
LB: loop body
LE: loop exit
PB: predicated region body
PF: predicated region fallthrough
CT: control target
= control target key end

     0   :  { %10 = vsyncpa [#allocation3], 0  ;;  %s738_s0 = inlined_call_operand.hbm [shape: bf16[16,32], index: 0, kind: input, shape index: {}, may-alias: {0,5}]   ;;  %s739_s1 = inlined_call_operand.hbm [shape: f32[1,32], index: 1, kind: input, shape index: {}]   ;;  %s740_s2 = inlined_call_operand.hbm [shape: bf16[32,64], index: 2, kind: input, shape index: {}]   ;;  %s741_s3 = inlined_call_operand.hbm [shape: bf16[32,64], index: 3, kind: input, shape index: {}]   ;;  %s742_s4 = inlined_call_operand.hbm [shape: bf16[64,32], index: 4, kind: input, shape index: {}]   ;;  %s743_s5 = inlined_call_operand.hbm [shape: bf16[16,32], index: 5, kind: output, shape index: {}, may-alias: {0,5}]  }
   0x1   :  { %11 = vsyncpa [#allocation6], 0 }
   0x2   :  { %12 = vsyncpa [#allocation9], 0 }
   0x3   :  { %13 = vsyncpa [#allocation4], 0  ;;  %s592_s18 = smov [#allocation5]   ;;  %s452_s22 = scalar_lea.hbm %s739_s1, 16 }
   0x4   :  { %s32_s19 = sshll.u32 %s592_s18, 4  ;;  %p453_p0 = scmp.ne.s32.totalorder %s739_s1, %s452_s22  ;;  %s33_s19 = int_to_ptr.vmem [resolvable:$true] %s32_s19 }
   0x5   :  { %p456_p1 = scmp.lt.u32.totalorder %s452_s22, %s739_s1 }
   0x7   :  { %p458_p2 = pnand %p456_p1, %p453_p0 }
   0x9   :  { %461 = shalt.err (!%p458_p2)
}
   0xa   :  { %s462_s27 = scalar_lea.vmem %s33_s19, 16  ;;  %s466_s28 = scalar_lea.vmem %s33_s19, 32 }
   0xb   :  { %p463_p3 = scmp.ne.s32.totalorder %s33_s19, %s462_s27  ;;  %p467_p4 = scmp.lt.s32.totalorder %s33_s19, %s33_s19 }
   0xc   :  { %p468_p5 = scmp.lt.s32.totalorder %s466_s28, %s462_s27 }
   0xe   :  { %p469_p6 = por %p468_p5, %p467_p4 }
  0x10   :  { %p470_p7 = pnand %p469_p6, %p463_p3 }
  0x12   :  { %473 = shalt.err (!%p470_p7)
}
  0x13   :  { %35 = dma.hbm_to_vmem [thread:$0]  %s739_s1, 16, %s33_s19, [#allocation6]  }
  0x14   :  { %s593_s6 = smov [#allocation8]   ;;  %s594_s8 = smov [#allocation2]  }
  0x15   :  { %s53_s7 = sshll.u32 %s593_s6, 4  ;;  %s19_s9 = sshll.u32 %s594_s8, 4  ;;  %s54_s7 = int_to_ptr.vmem [resolvable:$true] %s53_s7  ;;  %s20_s9 = int_to_ptr.vmem [resolvable:$true] %s19_s9 }
  0x16   :  { %s474_s12 = scalar_lea.hbm %s741_s3, 256 }
  0x17   :  { %p475_p8 = scmp.ne.s32.totalorder %s741_s3, %s474_s12  ;;  %p478_p9 = scmp.lt.u32.totalorder %s474_s12, %s741_s3 }
  0x19   :  { %p480_p10 = pnand %p478_p9, %p475_p8 }
  0x1b   :  { %483 = shalt.err (!%p480_p10)
}
  0x1c   :  { %s484_s1 = scalar_lea.vmem %s54_s7, 256  ;;  %p489_p12 = scmp.lt.s32.totalorder %s54_s7, %s54_s7 }
  0x1d   :  { %p485_p11 = scmp.ne.s32.totalorder %s54_s7, %s484_s1  ;;  %p490_p13 = scmp.lt.s32.totalorder %s484_s1, %s484_s1 }
  0x1f   :  { %p491_p0 = por %p490_p13, %p489_p12 }
  0x21   :  { %p492_p1 = pnand %p491_p0, %p485_p11 }
  0x23   :  { %495 = shalt.err (!%p492_p1)
}
  0x24   :  { %s595_s17 = smov 64   ;;  %s596_s18 = smov 4  }
  0x25   :  { %59 = dma.hbm_to_vmem [thread:$0]  %s741_s3, 256, %s54_s7, [#allocation9], %s595_s17, %s595_s17, %s596_s18  }
  0x26   :  { %s496_s23 = scalar_lea.hbm %s738_s0, 128 }
  0x27   :  { %p497_p2 = scmp.ne.s32.totalorder %s738_s0, %s496_s23  ;;  %p500_p3 = scmp.lt.u32.totalorder %s496_s23, %s738_s0 }
  0x29   :  { %p502_p4 = pnand %p500_p3, %p497_p2 }
  0x2b   :  { %505 = shalt.err (!%p502_p4)
}
  0x2c   :  { %s506_s28 = scalar_lea.vmem %s20_s9, 128  ;;  %p511_p6 = scmp.lt.s32.totalorder %s20_s9, %s20_s9 }
  0x2d   :  { %p507_p5 = scmp.ne.s32.totalorder %s20_s9, %s506_s28  ;;  %p512_p7 = scmp.lt.s32.totalorder %s506_s28, %s506_s28 }
  0x2f   :  { %p513_p8 = por %p512_p7, %p511_p6 }
  0x31   :  { %p514_p9 = pnand %p513_p8, %p507_p5 }
  0x33   :  { %517 = shalt.err (!%p514_p9)
}
  0x34   :  { %25 = dma.hbm_to_vmem [thread:$0]  %s738_s0, 128, %s20_s9, [#allocation3], %s595_s17, %s595_s17, %s596_s18  }
  0x35   :  { %s597_s30 = smov [#allocation7]   ;;  %s598_s7 = smov [#allocation10]  }
  0x36   :  { %s41_s6 = sshll.u32 %s597_s30, 4  ;;  %s65_s8 = sshll.u32 %s598_s7, 4  ;;  %s42_s6 = int_to_ptr.vmem [resolvable:$true] %s41_s6  ;;  %s66_s8 = int_to_ptr.vmem [resolvable:$true] %s65_s8 }
  0x37   :  { %s518_s12 = scalar_lea.hbm %s740_s2, 256 }
  0x38   :  { %p519_p10 = scmp.ne.s32.totalorder %s740_s2, %s518_s12  ;;  %p522_p11 = scmp.lt.u32.totalorder %s518_s12, %s740_s2 }
  0x3a   :  { %p524_p12 = pnand %p522_p11, %p519_p10 }
  0x3c   :  { %527 = shalt.err (!%p524_p12)
}
  0x3d   :  { %s528_s0 = scalar_lea.vmem %s42_s6, 256  ;;  %p533_p0 = scmp.lt.s32.totalorder %s42_s6, %s42_s6 }
  0x3e   :  { %p529_p13 = scmp.ne.s32.totalorder %s42_s6, %s528_s0  ;;  %p534_p1 = scmp.lt.s32.totalorder %s528_s0, %s528_s0 }
  0x40   :  { %p535_p2 = por %p534_p1, %p533_p0 }
  0x42   :  { %p536_p3 = pnand %p535_p2, %p529_p13 }
  0x44   :  { %539 = shalt.err (!%p536_p3)
}
  0x45   :  { %47 = dma.hbm_to_vmem [thread:$0]  %s740_s2, 256, %s42_s6, [#allocation6], %s595_s17, %s595_s17, %s596_s18  }
  0x46   :  { %s540_s21 = scalar_lea.hbm %s742_s4, 512 }
  0x47   :  { %p541_p4 = scmp.ne.s32.totalorder %s742_s4, %s540_s21  ;;  %p544_p5 = scmp.lt.u32.totalorder %s540_s21, %s742_s4 }
  0x49   :  { %p546_p6 = pnand %p544_p5, %p541_p4 }
  0x4b   :  { %549 = shalt.err (!%p546_p6)
}
  0x4c   :  { %s550_s26 = scalar_lea.vmem %s66_s8, 512  ;;  %p555_p8 = scmp.lt.s32.totalorder %s66_s8, %s66_s8 }
  0x4d   :  { %p551_p7 = scmp.ne.s32.totalorder %s66_s8, %s550_s26  ;;  %p556_p9 = scmp.lt.s32.totalorder %s550_s26, %s550_s26 }
  0x4f   :  { %p557_p10 = por %p556_p9, %p555_p8 }
  0x51   :  { %p558_p11 = pnand %p557_p10, %p551_p7 }
  0x53   :  { %561 = shalt.err (!%p558_p11)
}
  0x54   :  { %71 = dma.hbm_to_vmem [thread:$0]  %s742_s4, 512, %s66_s8, [#allocation9], %s595_s17, %s595_s17, %s596_s18  }
  0x55   :  { %584 = dma.done.wait [#allocation3], 128  }
  0x56   :  { %585 = vsyncadd [#allocation3], 4294967168 }
  0x57   :  { %586 = dma.done.wait [#allocation6], 272  }
  0x58   :  { %587 = vsyncadd [#allocation6], 4294967024 }
  0x59   :  { %588 = dma.done.wait [#allocation9], 768  }
  0x5a   :  { %589 = vsyncadd [#allocation9], 4294966528  ;;  %v384_v0 = vld [vmem:[#allocation2] sm:$0xff]   ;;  %vm94_vm0 = vcmask 261120   ;;  %v436_v7 = vld [vmem:[#allocation7] sm:$0xff]   ;;  %v599_v8 = vmov 0.0  }
  0x5b   :  { %v704_v1 = vunpack.c.l.bf16 %v384_v0  ;;  %v706_v2 = vunpack.c.h.bf16 %v384_v0  ;;  %398 = vmatprep.subr.bf16.mxu1 %v599_v8  ;;  %vm600_vm1 = vmmov 0   ;;  %v437_v9 = vld [vmem:[#allocation7 + $0x8] sm:$0xff]   ;;  %414 = vmatprep.subr.bf16.mxu0 %v599_v8  ;;  %v367_v19 = vld [vmem:[#allocation5] ss:$0 sm:$0xff]  ;;  %v438_v23 = vld [vmem:[#allocation8] sm:$0xff]   ;;  %vm290_vm2 = vcmask 523264  }
  0x5c   :  { %402 = vmatprep.mubr.msk.bf16.mxu1 %vm600_vm1, %v599_v8  ;;  %399 = vmatpush3.bf16.msra.mxu1 %v436_v7  ;;  %v439_v25 = vld [vmem:[#allocation8 + $0x8] sm:$0xff]   ;;  %v440_v26 = vld [vmem:[#allocation10] sm:$0xff]   ;;  %v441_v27 = vld [vmem:[#allocation10 + $0x8] sm:$0xff]   ;;  %vm345_vm3 = vcmask 257024   ;;  %s601_s4 = smov [#allocation11]  }
  0x5d   :  { %v92_v3 = vmul.f32 %v704_v1, %v704_v1  ;;  %v93_v4 = vmul.f32 %v706_v2, %v706_v2  ;;  %400 = vmatprep.subr.bf16.mxu1 %v599_v8  ;;  %422 = vmatprep.mubr.msk.bf16.mxu0 %vm600_vm1, %v599_v8  ;;  %v442_v28 = vld [vmem:[#allocation10 + $0x10] sm:$0xff]   ;;  %v443_v29 = vld [vmem:[#allocation10 + $0x18] sm:$0xff]   ;;  %s353_s28 = sshll.u32 %s601_s4, 4  ;;  %s354_s28 = int_to_ptr.vmem [resolvable:$true] %s353_s28 }
  0x5e   :  { %415 = vmatpush3.bf16.msra.mxu0 %v440_v26  ;;  %s562_s3 = scalar_lea.vmem %s354_s28, 128  ;;  %p567_p13 = scmp.lt.s32.totalorder %s354_s28, %s354_s28 }
  0x5f   :  { %v95_v5 = vsel %vm94_vm0, %v92_v3, 0.0  ;;  %v98_v6 = vsel %vm94_vm0, %v93_v4, 0.0  ;;  %416 = vmatprep.subr.bf16.mxu0 %v599_v8  ;;  %p563_p12 = scmp.ne.s32.totalorder %s354_s28, %s562_s3  ;;  %p568_p0 = scmp.lt.s32.totalorder %s562_s3, %s562_s3 }
  0x60   :  { %96 = vadd.xlane.f32.xlu0 %v95_v5  ;;  %401 = vmatpush3.bf16.msra.mxu1 %v437_v9 }
  0x61   :  { %406 = vmatprep.subr.bf16.mxu1 %v599_v8  ;;  %p569_p1 = por %p568_p0, %p567_p13 }
  0x62   :  { %417 = vmatpush3.bf16.msra.mxu0 %v441_v27 }
  0x63   :  { %418 = vmatprep.subr.bf16.mxu0 %v599_v8  ;;  %p570_p2 = pnand %p569_p1, %p563_p12 }
  0x64   :  { %99 = vadd.xlane.f32.xlu0 %v98_v6 }
  0x66   :  { %419 = vmatpush3.bf16.msra.mxu0 %v442_v28 }
  0x67   :  { %420 = vmatprep.subr.bf16.mxu0 %v599_v8 }
  0x6a   :  { %421 = vmatpush3.bf16.msra.mxu0 %v443_v29 }
  0xed   :  { %v97_v10 = vpop.xlane.xlu0 %96 }
  0xee   :  { %v102_v11 = vmul.f32 0.03125, %v97_v10 }
  0xf0   :  { %v104_v12 = vadd.f32 1e-06, %v102_v11 }
  0xf1   :  { %v100_v13 = vpop.xlane.xlu0 %99 }
  0xf2   :  { %444 = vrsqrt.f32 %v104_v12  ;;  %v103_v14 = vmul.f32 0.03125, %v100_v13 }
  0xf4   :  { %v105_v15 = vadd.f32 1e-06, %v103_v14 }
  0xf6   :  { %446 = vrsqrt.f32 %v105_v15 }
  0xfc   :  { %v445_v16 = vpop.eup %444 }
  0xfd   :  { %v108_v17 = vmul.f32 %v445_v16, %v704_v1 }
  0xff   :  { %v117_v21 = vmul.f32 %v367_v19, %v108_v17 }
 0x100   :  { %v447_v18 = vpop.eup %446 }
 0x101   :  { %v109_v20 = vmul.f32 %v447_v18, %v706_v2 }
 0x103   :  { %v118_v22 = vmul.f32 %v367_v19, %v109_v20 }
 0x105   :  { %v119_v24 = vpack.c.bf16 %v118_v22, %v117_v21 }
 0x107   :  { %403 = vmatmul.mubr.msk.bf16.vlgmr.msra.gmra.mrb[0].mxu1 %vm94_vm0, %v119_v24 }
 0x108   :  { %407 = vmatpush3.bf16.msra.mxu1 %v438_v23  ;;  %410 = vmatprep.mubr.msk.bf16.mxu1 %vm600_vm1, %v599_v8 }
 0x109   :  { %408 = vmatprep.subr.bf16.mxu1 %v599_v8 }
 0x10c   :  { %409 = vmatpush3.bf16.msra.mxu1 %v439_v25 }
 0x10f   :  { %411 = vmatmul.mubr.msk.bf16.vlgmr.msra.gmra.mrb[4].mxu1 %vm94_vm0, %v119_v24 }
 0x1da   :  { %v173_v30 = vpop.f32.mrb[0].mxu1 }
 0x1db   :  { %v180_v31 = vmul.f32 %v173_v30, %v173_v30  ;;  %v404_v32 = vpop.f32.mrb[1].mxu1 }
 0x1dc   :  { %v176_v33 = vpop.f32.mrb[2].mxu1 }
 0x1dd   :  { %v182_v34 = vmul.f32 %v180_v31, %v173_v30  ;;  %v181_v35 = vmul.f32 %v176_v33, %v176_v33  ;;  %v405_v36 = vpop.f32.mrb[3].mxu1 }
 0x1df   :  { %v184_v37 = vmul.f32 0.044715, %v182_v34  ;;  %v183_v38 = vmul.f32 %v181_v35, %v176_v33 }
 0x1e1   :  { %v186_v39 = vadd.f32 %v184_v37, %v173_v30  ;;  %v185_v40 = vmul.f32 0.044715, %v183_v38 }
 0x1e2   :  { %v248_v41 = vpop.f32.mrb[4].mxu1 }
 0x1e3   :  { %v188_v42 = vmul.f32 0.7978846, %v186_v39  ;;  %v187_v43 = vadd.f32 %v185_v40, %v176_v33  ;;  %v412_v44 = vpop.f32.mrb[5].mxu1 }
 0x1e4   :  { %v251_v45 = vpop.f32.mrb[6].mxu1 }
 0x1e5   :  { %448 = vtanh.f32 %v188_v42  ;;  %v189_v46 = vmul.f32 0.7978846, %v187_v43  ;;  %v413_v47 = vpop.f32.mrb[7].mxu1 }
 0x1e7   :  { %450 = vtanh.f32 %v189_v46 }
 0x1ef   :  { %v449_v48 = vpop.eup %448 }
 0x1f0   :  { %v192_v49 = vadd.f32 1.0, %v449_v48 }
 0x1f1   :  { %v451_v50 = vpop.eup %450 }
 0x1f2   :  { %v194_v51 = vmul.f32 0.5, %v192_v49  ;;  %v193_v52 = vadd.f32 1.0, %v451_v50 }
 0x1f4   :  { %v196_v53 = vmul.f32 %v194_v51, %v173_v30  ;;  %v195_v54 = vmul.f32 0.5, %v193_v52 }
 0x1f6   :  { %v255_v55 = vmul.f32 %v248_v41, %v196_v53  ;;  %v197_v56 = vmul.f32 %v195_v54, %v176_v33 }
 0x1f8   :  { %v256_v57 = vmul.f32 %v251_v45, %v197_v56 }
 0x1fa   :  { %v257_v58 = vpack.c.bf16 %v256_v57, %v255_v55 }
 0x1fc   :  { %423 = vmatmul.mubr.msk.bf16.vlgmr.msra.gmra.mrb[0].mxu0 %vm290_vm2, %v257_v58 }
 0x2cf   :  { %v328_v59 = vpop.f32.mrb[0].mxu0 }
 0x2d0   :  { %v335_v60 = vadd.f32 %v704_v1, %v328_v59  ;;  %v424_v61 = vpop.f32.mrb[1].mxu0 }
 0x2d1   :  { %v331_v62 = vpop.f32.mrb[2].mxu0 }
 0x2d2   :  { %v381_v63 = vpack.c.bf16 %v335_v60, %v335_v60  ;;  %v336_v0 = vadd.f32 %v706_v2, %v331_v62  ;;  %v425_v3 = vpop.f32.mrb[3].mxu0 }
 0x2d4   :  { %v382_v4 = vpack.c.bf16 %v336_v0, %v336_v0  ;;  %346 = vst.msk [vmem:[#allocation11] sm:$0xf] %vm345_vm3, %v381_v63 }
 0x2d6   :  { %347 = vst.msk [vmem:[#allocation11 + $0x4] sm:$0xf] %vm345_vm3, %v382_v4 }
 0x2d7   :  { %573 = shalt.err (!%p570_p2)
}
 0x2d8   :  { %s574_s6 = scalar_lea.hbm %s743_s5, 128 }
 0x2d9   :  { %p575_p3 = scmp.ne.s32.totalorder %s743_s5, %s574_s6  ;;  %p578_p4 = scmp.lt.u32.totalorder %s574_s6, %s743_s5 }
 0x2db   :  { %p580_p5 = pnand %p578_p4, %p575_p3 }
 0x2dd   :  { %583 = shalt.err (!%p580_p5)
}
 0x2de   :  { %359 = dma.vmem_to_hbm [thread:$0]  %s354_s28, 128, %s743_s5, [#allocation4], %s595_s17, %s595_s17, %s596_s18  }
 0x2df   :  { %590 = dma.done.wait [#allocation4], 128  }
 0x2e0   :  { %591 = vsyncadd [#allocation4], 4294967168 }
 0x2e1   :  { %363 = vsyncpa [#allocation3], 1 }
 0x2e2   :  { %364 = vsyncpa [#allocation6], 1 }
 0x2e3   :  { %365 = vsyncpa [#allocation9], 1 }
 0x2e4   :  { %366 = vsyncpa [#allocation4], 1 }

// kernel: mgen_encoder_forward.8
= control target key start
LH: loop header
LB: loop body
LE: loop exit
PB: predicated region body
PF: predicated region fallthrough
CT: control target
= control target key end

     0   :  { %s1976_s0 = inlined_call_operand.hbm [shape: bf16[2,8,96], index: 0, kind: input, shape index: {}]   ;;  %s1977_s1 = inlined_call_operand.hbm [shape: bf16[4,8,8], index: 1, kind: input, shape index: {}]   ;;  %s1978_s2 = inlined_call_operand.hbm [shape: f32[2,1,8], index: 2, kind: input, shape index: {}]   ;;  %s1979_s3 = inlined_call_operand.hbm [shape: bf16[32,32], index: 3, kind: input, shape index: {}]   ;;  %s1980_s4 = inlined_call_operand.hbm [shape: bf16[2,8,32], index: 4, kind: input, shape index: {}, may-alias: {4,5}]   ;;  %s1981_s5 = inlined_call_operand.hbm [shape: bf16[2,8,32], index: 5, kind: output, shape index: {}, may-alias: {4,5}]  }
   0x1   :  { %1997 = sst [smem:[#allocation19_spill]] %s1976_s0 }
   0x2   :  { %1998 = sst [smem:[#allocation20_spill]] %s1977_s1 }
   0x3   :  { %10 = vsyncpa [#allocation4], 0 }
   0x4   :  { %12 = vsyncpa [#allocation4 + $0x1], 0 }
   0x5   :  { %13 = vsyncpa [#allocation7], 0 }
   0x6   :  { %14 = vsyncpa [#allocation11], 0 }
   0x7   :  { %16 = vsyncpa [#allocation11 + $0x1], 0 }
   0x8   :  { %17 = vsyncpa [#allocation5], 0 }
   0x9   :  { %19 = vsyncpa [#allocation5 + $0x1], 0  ;;  %s1574_s18 = smov 0   ;;  %s1576_s19 = smov 0  }
   0xa   :  { %s1578_s20 = smov 0   ;;  %s1580_s21 = smov 0  }
   0xb LB: > { %s1595_s22 = sadd.s32 4294967295, %s1518_s21   ;;  %s1056_s23 = sadd.s32 4294967294, %s1518_s21   ;;  %s1518_s21 = sphi %s1580_s21, %s2031_s21   ;;  %s1514_s20 = sphi %s1578_s20, %s2030_s20   ;;  %s1510_s19 = sphi %s1576_s19, %s2029_s19   ;;  %s1506_s18 = sphi %s1574_s18, %s2028_s18  }
   0xc   : > { %p45_p0 = scmp.ne.s32.totalorder %s1510_s19, %s1506_s18  ;;  %p1982_p1 = scmp.eq.s32.totalorder %s1595_s22, 0 }
   0xd   : > { %p169_p3 = scmp.eq.s32.totalorder %s1056_s23, 1  ;;  %p1057_p5 = scmp.ge.s32.totalorder %s1518_s21, 1 }
   0xe   : > { %p1604_p4 = por %p1982_p1, %p45_p0  ;;  %p176_p7 = scmp.lt.s32.totalorder %s1518_s21, 3 }
   0xf   : > { %p1609_p6 = por %p169_p3, %p45_p0  ;;  %s1520_s27 = smov [#allocation6]  }
  0x10   : > { %s1999_s24 = scalar_select %p1604_p4, 1, 0 }
  0x11   : > { %s2000_s25 = scalar_select %p1609_p6, 1, 0 }
  0x12   : > { %p1614_p8 = pnand %p1057_p5, %p176_p7  ;;  %s188_s28 = sshll.u32 %s1520_s27, 4  ;;  %s1618_s28 = int_to_ptr.vmem [resolvable:$true] %s188_s28 }
  0x13   : > { %s1630_s30 = sadd.s32 1, %s1518_s21   ;;  %s32_s6 = sadd.s32 1, %s1514_s20 }
  0x14   : > { %s2001_s26 = scalar_select %p1614_p8, 1, 0 }
  0x15   : > { %p1189_p9 = pneg %p1614_p8  ;;  %s29_s7 = ssub.s32 %s1518_s21, %s1630_s30 }
  0x16   : > { %s2003_s1 = sld [smem:[#allocation20_spill]] }
  0x17   : > { %p1625_p11 = pnand %p1189_p9, %p1982_p1 }
  0x19   : > { %s2002_s29 = scalar_select %p1625_p11, 1, 0 }
  0x1a   : > { %p1987_p13 = pneg %p1625_p11 }
  0x1c   : > { %s1290_s10 = scalar_lea.hbm %s2003_s1, 256 }
  0x1d   : > { %p1291_p12 = scmp.ne.s32.totalorder %s2003_s1, %s1290_s10  ;;  %p1297_p5 = scmp.lt.u32.totalorder %s1290_s10, %s2003_s1 }
  0x1f   : > { %p1293_p0 = pnand %p1987_p13, %p1291_p12 }
  0x21   : > { %p1294_p3 = pneg %p1293_p0 }
  0x23   : > { %p1299_p7 = pnand %p1297_p5, %p1294_p3 }
  0x25   : > { %1302 = shalt.err (!%p1299_p7)
}
  0x26   : > { %s1303_s15 = scalar_lea.vmem %s1618_s28, 256  ;;  %p1311_p2 = scmp.lt.s32.totalorder %s1618_s28, %s1618_s28 }
  0x27   : > { %p1304_p9 = scmp.ne.s32.totalorder %s1618_s28, %s1303_s15  ;;  %p1312_p12 = scmp.lt.s32.totalorder %s1303_s15, %s1303_s15 }
  0x29   : > { %p1306_p10 = pnand %p1304_p9, %p1987_p13  ;;  %p1313_p0 = por %p1312_p12, %p1311_p2 }
  0x2b   : > { %p1307_p1 = pneg %p1306_p10 }
  0x2d   : > { %p1314_p6 = pnand %p1313_p0, %p1307_p1 }
  0x2f   : > { %1317 = shalt.err (!%p1314_p6)
}
  0x30   : > { %s1983_s16 = smov 64   ;;  %s1986_s17 = smov 4  }
  0x31   : > { %1192 = dma.hbm_to_vmem [thread:$0]  (!%p1625_p11), %s2003_s1, 256, %s1618_s28, [#allocation7], %s1983_s16, %s1983_s16, %s1986_s17  }
  0x32   : > { %p30_p1 = scmp.eq.s32.totalorder %s29_s7, 0  ;;  %p39_p2 = scmp.ne.s32.totalorder %s1514_s20, %s1510_s19 }
  0x33   : > { %p40_p6 = scmp.eq.s32.totalorder %s1518_s21, 0  ;;  %p1212_p10 = scmp.lt.s32.totalorder %s1518_s21, 2 }
  0x34   : > { %s1670_s8 = scalar_select %p30_p1, %s1514_s20, %s32_s6  }
  0x35   : > { %p41_p3 = por %p40_p6, %p39_p2  ;;  %p2004_p5 = scmp.eq.s32.totalorder %s1595_s22, 1 }
  0x36   : > { %s215_s10 = sand.u32 1, %s1518_s21   ;;  %s1680_s11 = sand.u32 1, %s1514_s20  }
  0x37   : > { %p1674_p7 = por %p2004_p5, %p39_p2  ;;  %s1985_s12 = sshll.u32 %s1680_s11, 2 }
  0x38   : > { %s1984_s13 = sshll.u32 %s1518_s21, 6  ;;  %s2006_s0 = sld [smem:[#allocation19_spill]] }
  0x39   : > { %s2005_s9 = scalar_select %p1674_p7, 1, 0 }
  0x3a   : > { %s219_s6 = scalar_lea.vmem [#allocation3], %s1985_s12  ;;  %p1695_p9 = pnand %p1212_p10, %p41_p3 }
  0x3b   : > { %s226_s15 = sshll.u32 %s219_s6, 4  ;;  %s1523_s27 = smov [#allocation9]   ;;  %s1693_s15 = int_to_ptr.vmem [resolvable:$true] %s226_s15 }
  0x3c   : > { %s2007_s23 = scalar_select %p1695_p9, 1, 0 }
  0x3d   : > { %s1699_s16 = sshll.u32 %s1523_s27, 4  ;;  %s1701_s28 = scalar_lea.sflag [#allocation4], %s215_s10  ;;  %s202_s16 = int_to_ptr.vmem [resolvable:$true] %s1699_s16 }
  0x3e   : > { %s1689_s14 = scalar_lea.hbm %s2006_s0, %s1984_s13  ;;  %p1707_p0 = pneg %p1695_p9 }
  0x3f   : > { %s1318_s7 = scalar_lea.hbm %s1689_s14, 64  ;;  %s1323_s17 = scalar_lea.hbm %s2006_s0, 128 }
  0x40   : > { %p1319_p12 = scmp.ne.s32.totalorder %s1689_s14, %s1318_s7  ;;  %p1324_p6 = scmp.lt.u32.totalorder %s1689_s14, %s2006_s0 }
  0x41   : > { %s2008_s13 = scalar_select %p1707_p0, 1, 0 }
  0x42   : > { %p1321_p1 = pnand %p1707_p0, %p1319_p12  ;;  %p1325_p10 = scmp.lt.u32.totalorder %s1323_s17, %s1318_s7 }
  0x43   : > { %p1327_p5 = scmp.lt.u32.totalorder %s1318_s7, %s1689_s14 }
  0x44   : > { %p1322_p2 = pneg %p1321_p1  ;;  %p1326_p3 = por %p1325_p10, %p1324_p6 }
  0x46   : > { %p1328_p13 = por %p1327_p5, %p1326_p3 }
  0x48   : > { %p1329_p7 = pnand %p1328_p13, %p1322_p2 }
  0x4a   : > { %1332 = shalt.err (!%p1329_p7)
}
  0x4b   : > { %s1333_s10 = scalar_lea.vmem %s1693_s15, 64  ;;  %s1524_s12 = smov [#allocation3]  }
  0x4c   : > { %p1334_p12 = scmp.ne.s32.totalorder %s1693_s15, %s1333_s10  ;;  %s1338_s6 = sshll.u32 %s1524_s12, 4  ;;  %s1339_s6 = int_to_ptr.vmem [resolvable:$false] %s1338_s6 }
  0x4d   : > { %s1340_s1 = scalar_lea.vmem %s1339_s6, 128  ;;  %p1341_p8 = scmp.lt.s32.totalorder %s1693_s15, %s1339_s6 }
  0x4e   : > { %p1336_p1 = pnand %p1334_p12, %p1707_p0  ;;  %p1342_p11 = scmp.lt.s32.totalorder %s1340_s1, %s1333_s10 }
  0x50   : > { %p1337_p4 = pneg %p1336_p1  ;;  %p1343_p6 = por %p1342_p11, %p1341_p8 }
  0x52   : > { %p1344_p10 = pnand %p1343_p6, %p1337_p4 }
  0x54   : > { %1347 = shalt.err (!%p1344_p10)
}
  0x55   : > { %1199 = dma.hbm_to_vmem [thread:$0]  (!%p1695_p9), %s1689_s14, 64, %s1693_s15, %s1701_s28  }
  0x56   : > { %s1063_s17 = sshll.u32 %s1518_s21, 4  ;;  %s1348_s12 = scalar_lea.hbm %s1979_s3, 256 }
  0x57   : > { %p1349_p4 = scmp.ne.s32.totalorder %s1979_s3, %s1348_s12  ;;  %p2009_p8 = scmp.ne.s32.totalorder %s2002_s29, 0 }
  0x58   : > { %p1355_p2 = scmp.lt.u32.totalorder %s1348_s12, %s1979_s3 }
  0x59   : > { %p2010_p11 = pneg %p2009_p8 }
  0x5b   : > { %p1351_p13 = pnand %p1349_p4, %p2010_p11 }
  0x5d   : > { %p1352_p7 = pneg %p1351_p13 }
  0x5f   : > { %p1357_p3 = pnand %p1355_p2, %p1352_p7 }
  0x61   : > { %1360 = shalt.err (!%p1357_p3)
}
  0x62   : > { %s1361_s14 = scalar_lea.vmem %s202_s16, 256  ;;  %p2011_p12 = pmov %p2010_p11 }
  0x63   : > { %p1362_p5 = scmp.ne.s32.totalorder %s202_s16, %s1361_s14  ;;  %p1369_p10 = scmp.lt.s32.totalorder %s202_s16, %s202_s16 }
  0x64   : > { %p1370_p9 = scmp.lt.s32.totalorder %s1361_s14, %s1361_s14 }
  0x65   : > { %p1364_p1 = pnand %p1362_p5, %p2011_p12 }
  0x66   : > { %p1371_p0 = por %p1370_p9, %p1369_p10 }
  0x67   : > { %p1365_p6 = pneg %p1364_p1 }
  0x69   : > { %p1372_p4 = pnand %p1371_p0, %p1365_p6 }
  0x6b   : > { %1375 = shalt.err (!%p1372_p4)
}
  0x6c   : > { %s2012_s15 = smov 4   ;;  %s2013_s7 = smov 64  }
  0x6d   : > { %1195 = dma.hbm_to_vmem [thread:$0]  (!%p2009_p8), %s1979_s3, 256, %s202_s16, [#allocation7], %s2013_s7, %s2013_s7, %s2012_s15  }
  0x6e   : > { %s1759_s10 = scalar_lea.hbm %s1978_s2, %s1063_s17  ;;  %s236_s1 = scalar_lea.vmem [#allocation8], %s1680_s11 }
  0x6f   : > { %s243_s29 = sshll.u32 %s236_s1, 4  ;;  %s1376_s14 = scalar_lea.hbm %s1759_s10, 16  ;;  %s244_s29 = int_to_ptr.vmem [resolvable:$true] %s243_s29 }
  0x70   : > { %p1377_p9 = scmp.ne.s32.totalorder %s1759_s10, %s1376_s14  ;;  %p2014_p0 = scmp.ne.s32.totalorder %s2008_s13, 0 }
  0x71   : > { %s1381_s16 = scalar_lea.hbm %s1978_s2, 32  ;;  %p1382_p8 = scmp.lt.u32.totalorder %s1759_s10, %s1978_s2 }
  0x72   : > { %p1379_p11 = pnand %p1377_p9, %p2014_p0  ;;  %p1383_p7 = scmp.lt.u32.totalorder %s1381_s16, %s1376_s14 }
  0x73   : > { %p1385_p3 = scmp.lt.u32.totalorder %s1376_s14, %s1759_s10 }
  0x74   : > { %p1380_p13 = pneg %p1379_p11  ;;  %p1384_p2 = por %p1383_p7, %p1382_p8 }
  0x76   : > { %p1386_p5 = por %p1385_p3, %p1384_p2 }
  0x78   : > { %p1387_p12 = pnand %p1386_p5, %p1380_p13 }
  0x7a   : > { %1390 = shalt.err (!%p1387_p12)
}
  0x7b   : > { %s1391_s17 = scalar_lea.vmem %s244_s29, 16  ;;  %s1525_s12 = smov [#allocation8]  }
  0x7c   : > { %p1392_p1 = scmp.ne.s32.totalorder %s244_s29, %s1391_s17  ;;  %s1396_s6 = sshll.u32 %s1525_s12, 4  ;;  %s1397_s6 = int_to_ptr.vmem [resolvable:$false] %s1396_s6 }
  0x7d   : > { %s1398_s1 = scalar_lea.vmem %s1397_s6, 32  ;;  %p1399_p4 = scmp.lt.s32.totalorder %s244_s29, %s1397_s6 }
  0x7e   : > { %p1394_p6 = pnand %p1392_p1, %p2014_p0  ;;  %p1400_p9 = scmp.lt.s32.totalorder %s1398_s1, %s1391_s17 }
  0x80   : > { %p1395_p10 = pneg %p1394_p6  ;;  %p1401_p11 = por %p1400_p9, %p1399_p4 }
  0x82   : > { %p1402_p7 = pnand %p1401_p11, %p1395_p10 }
  0x84   : > { %1405 = shalt.err (!%p1402_p7)
}
  0x85   : > { %p2015_p8 = scmp.ne.s32.totalorder %s2007_s23, 0  ;;  %s2016_s14 = sshll.u32 %s1518_s21, 6 }
  0x86   : > { %s1785_s16 = scalar_lea.hbm %s1980_s4, %s2016_s14  ;;  %s2017_s15 = sshll.u32 %s1680_s11, 2 }
  0x87   : > { %1202 = dma.hbm_to_vmem [thread:$0]  (!%p2015_p8), %s1759_s10, 16, %s244_s29, %s1701_s28  }
  0x88   : > { %s254_s7 = scalar_lea.vmem [#allocation10], %s2017_s15  ;;  %s251_s12 = scalar_lea.sflag [#allocation11], %s1680_s11 }
  0x89   : > { %s261_s17 = sshll.u32 %s254_s7, 4  ;;  %s1406_s6 = scalar_lea.hbm %s1785_s16, 64  ;;  %s262_s17 = int_to_ptr.vmem [resolvable:$true] %s261_s17 }
  0x8a   : > { %p1407_p13 = scmp.ne.s32.totalorder %s1785_s16, %s1406_s6  ;;  %s1411_s29 = scalar_lea.hbm %s1980_s4, 128 }
  0x8b   : > { %p1412_p5 = scmp.lt.u32.totalorder %s1785_s16, %s1980_s4  ;;  %p1413_p12 = scmp.lt.u32.totalorder %s1411_s29, %s1406_s6 }
  0x8c   : > { %p1409_p2 = pnand %p1407_p13, %p2014_p0  ;;  %p1415_p6 = scmp.lt.u32.totalorder %s1406_s6, %s1785_s16 }
  0x8d   : > { %p1414_p1 = por %p1413_p12, %p1412_p5 }
  0x8e   : > { %p1410_p3 = pneg %p1409_p2 }
  0x8f   : > { %p1416_p10 = por %p1415_p6, %p1414_p1 }
  0x91   : > { %p1417_p4 = pnand %p1416_p10, %p1410_p3 }
  0x93   : > { %1420 = shalt.err (!%p1417_p4)
}
  0x94   : > { %s1421_s11 = scalar_lea.vmem %s262_s17, 64  ;;  %s1526_s0 = smov [#allocation10]  }
  0x95   : > { %p1422_p9 = scmp.ne.s32.totalorder %s262_s17, %s1421_s11  ;;  %s1426_s27 = sshll.u32 %s1526_s0, 4  ;;  %s1427_s27 = int_to_ptr.vmem [resolvable:$false] %s1426_s27 }
  0x96   : > { %s1428_s15 = scalar_lea.vmem %s1427_s27, 128  ;;  %p1429_p13 = scmp.lt.s32.totalorder %s262_s17, %s1427_s27 }
  0x97   : > { %p1424_p11 = pnand %p1422_p9, %p2014_p0  ;;  %p1430_p2 = scmp.lt.s32.totalorder %s1428_s15, %s1421_s11 }
  0x99   : > { %p1425_p7 = pneg %p1424_p11  ;;  %p1431_p8 = por %p1430_p2, %p1429_p13 }
  0x9b   : > { %p1432_p5 = pnand %p1431_p8, %p1425_p7 }
  0x9d   : > { %1435 = shalt.err (!%p1432_p5)
}
  0x9e   : > { %p2018_p12 = scmp.ne.s32.totalorder %s2007_s23, 0  ;;  %p2019_p3 = scmp.ne.s32.totalorder %s2001_s26, 0 }
  0x9f   : > { %s272_s13 = sand.u32 (!%p2019_p3), 1, %s1595_s22   ;;  %s1811_s7 = sand.u32 (!%p2019_p3), 1, %s1510_s19  }
  0xa0   : > { %1205 = dma.hbm_to_vmem [thread:$0]  (!%p2018_p12), %s1785_s16, 64, %s262_s17, %s251_s12  }
  0xa1   : > { %270 = sbr.rel (%p2019_p3) target bundleno = 2006 (0x7d6), region = 40  ;;  %s1814_s6 = sshll.u32 (!%p2019_p3), %s1811_s7, 2 }
  0xa2   : > { %s273_s28 = scalar_lea.sflag (!%p2019_p3), [#allocation4], %s272_s13  ;;  %s1817_s10 = scalar_lea.vmem (!%p2019_p3), [#allocation3], %s1814_s6 }
  0xa3   : > { %p2020_p0 = scmp.ne.s32.totalorder (!%p2019_p3), %s1999_s24, 0 }
  0xa8   : > { %1481 = dma.done.wait (%p2020_p0), %s273_s28, 64  }
  0xa9   : > { %1483 = vsyncadd (%p2020_p0), %s273_s28, 4294967232  ;;  %p2021_p8 = scmp.eq.s32.totalorder %s1595_s22, 0 }
  0xab   : > { %1485 = dma.done.wait (%p2021_p8), [#allocation7], 256   ;;  %p2022_p1 = pmov %p2021_p8 }
  0xac   : > { %s288_s26 = scalar_lea.vmem [#allocation8], %s1811_s7 }
  0xad   : > { %1487 = vsyncadd (%p2022_p1), [#allocation7], 4294967040 }
  0xae   : > { %1489 = dma.done.wait (%p2020_p0), %s273_s28, 16  }
  0xaf   : > { %1491 = vsyncadd (%p2020_p0), %s273_s28, 4294967280  ;;  %p2023_p6 = pmov %p2022_p1 }
  0xb0   : > { %p2024_p10 = pmov %p2022_p1 }
  0xb1   : > { %1493 = dma.done.wait (%p2023_p6), [#allocation7], 256  }
  0xb2   : > { %1495 = vsyncadd (%p2024_p10), [#allocation7], 4294967040  ;;  %s298_s23 = scalar_lea.sflag [#allocation11], %s1811_s7  ;;  %s301_s16 = scalar_lea.vmem [#allocation10], %s1814_s6 }
  0xb3   : > { %1497 = dma.done.wait (%p2020_p0), %s298_s23, 64  }
  0xb4   : > { %1499 = vsyncadd (%p2020_p0), %s298_s23, 4294967232  ;;  %v1527_v0 = vmov 0.0   ;;  %vm1528_vm0 = vmmov 0   ;;  %v339_v1 = vld [vmem:[%s1817_s10] sm:$0xf]  ;;  %s1529_s17 = smov 96  }
  0xb5   : > { %1117 = vmatprep.subr.bf16.mxu0 %v1527_v0  ;;  %1119 = vmatprep.mubr.msk.bf16.mxu0 %vm1528_vm0, %v1527_v0  ;;  %v1072_v2 = vcombine.low %v339_v1, %v339_v1  ;;  %vm347_vm1 = vcmask 64512   ;;  %s1530_s24 = smov 64   ;;  %v1855_v5 = vld [vmem:[%s1817_s10] ss:$0 sps:$4 sm:$0xff]   ;;  %s1531_s12 = smov 88   ;;  %v1858_v6 = vld [vmem:[#allocation6] sm:$0xff]  }
  0xb6   : > { %1123 = vmatprep.subr.bf16.mxu1 %v1527_v0  ;;  %1125 = vmatprep.mubr.msk.bf16.mxu1 %vm1528_vm0, %v1527_v0  ;;  %v341_v7 = vunpack.c.l.bf16 %v1858_v6  ;;  %v1863_v9 = vld [vmem:[%s288_s26] ss:$0 sm:$0xff]  ;;  %v1868_v16 = vld [vmem:[%s1817_s10] ss:$0 sps:$4 sm:$0xff]   ;;  %s1532_s29 = smov 72   ;;  %vm418_vm2 = vcmask 1043456   ;;  %v468_v43 = vunpack.c.h.bf16 %v1858_v6 }
  0xb7   : > { %345 = vrot.lane.b32.xlu0 %v1072_v2, %s1529_s17  ;;  %413 = vrot.lane.b32.xlu1 %v1072_v2, %s1530_s24  ;;  %s1533_s1 = smov 120   ;;  %v1876_v24 = vld [vmem:[%s1817_s10] ss:$0 sps:$4 sm:$0xff]   ;;  %s1534_s14 = smov 80   ;;  %vm463_vm3 = vcmask 60416   ;;  %v594_v48 = vld [vmem:[#allocation6 + $0x8] sm:$0xff]  }
  0xb8   : > { %s1535_s11 = smov 112   ;;  %s1536_s0 = smov 104   ;;  %v595_v52 = vunpack.c.l.bf16 %v594_v48  ;;  %v722_v60 = vunpack.c.h.bf16 %v594_v48  ;;  %vm590_vm4 = vcmask 126016   ;;  %vm717_vm5 = vcmask 191616  }
  0xb9   : > { %s1537_s27 = smov 56   ;;  %s1538_s15 = smov 48   ;;  %vm844_vm6 = vcmask 257216   ;;  %vm863_vm7 = vcmask 261120   ;;  %vm911_vm8 = vcmask 257024  }
  0xba   : > { %s1539_s13 = smov 40   ;;  %s1540_s28 = smov 8  }
  0xbb   : > { %474 = vrot.lane.b32.xlu1 %v1855_v5, %s1531_s12  ;;  %s1541_s10 = smov 16   ;;  %s1542_s26 = smov 24  }
  0xbc   : > { %s1092_s23 = sshll.u32 %s1595_s22, 6  ;;  %s336_s17 = scalar_lea.vmem [#allocation12], %s1814_s6 }
  0xbd   : > { %s927_s24 = sshll.u32 %s336_s17, 4  ;;  %s914_s22 = scalar_lea.sflag [#allocation5], %s1811_s7  ;;  %s1934_s24 = int_to_ptr.vmem [resolvable:$true] %s927_s24 }
  0xbe   : > { %s1436_s6 = scalar_lea.vmem %s1934_s24, 64  ;;  %p2025_p9 = scmp.ne.s32.totalorder %s2005_s9, 0 }
  0xbf   : > { %p1437_p4 = scmp.ne.s32.totalorder %s1934_s24, %s1436_s6 }
  0xc1   : > { %p1438_p11 = pnand %p1437_p4, %p2025_p9 }
  0xc3   : > { %p1439_p7 = pneg %p1438_p11 }
 0x129   : > { %v346_v3 = vpop.permute.xlu0 %345  ;;  %v414_v17 = vpop.permute.xlu1 %413 }
 0x12a   : > { %v352_v4 = vsel %vm347_vm1, %v346_v3, 0  ;;  %v420_v18 = vsel %vm418_vm2, %v414_v17, 0 }
 0x12b   : > { %1118 = vmatpush3.bf16.xpose.msra.mxu0 %v352_v4  ;;  %1124 = vmatpush3.bf16.msra.mxu1 %v420_v18 }
 0x12c   : > { %1135 = vmatprep.subr.bf16.mxu0 %v1527_v0  ;;  %1129 = vmatprep.subr.bf16.mxu1 %v1527_v0 }
 0x12d   : > { %v475_v25 = vpop.permute.xlu1 %474 }
 0x12e   : > { %v480_v31 = vsel %vm347_vm1, %v475_v25, 0 }
 0x132   : > { %1120 = vmatmul.mubr.msk.bf16.vlgmr.msra.gmra.mrb[0].mxu0 %vm347_vm1, %v339_v1 }
 0x133   : > { %1137 = vmatprep.mubr.msk.bf16.mxu0 %vm1528_vm0, %v1527_v0 }
 0x205   : > { %v388_v8 = vpop.f32.mrb[0].mxu0 }
 0x206   : > { %v389_v10 = vadd.f32 %v388_v8, %v341_v7  ;;  %v1121_v11 = vpop.f32.mrb[1].mxu0 }
 0x207   : > { %v391_v12 = vpop.f32.mrb[2].mxu0 }
 0x208   : > { %v1122_v13 = vpop.f32.mrb[3].mxu0  ;;  %v400_v14 = vadd.f32 %v1863_v9, %v389_v10 }
 0x20a   : > { %v401_v15 = vsel %vm347_vm1, %v400_v14, -inf }
 0x20b   : > { %402 = vmax.xlane.f32.xlu0 %v401_v15 }
 0x221   : > { %728 = vrot.lane.b32.xlu0 %v1868_v16, %s1532_s29 }
 0x298   : > { %v403_v19 = vpop.xlane.xlu0 %402 }
 0x299   : > { %v404_v20 = vsub.f32 %v400_v14, %v403_v19 }
 0x29b   : > { %v405_v21 = vmul.f32 1.442695, %v404_v20 }
 0x29c   : > { %v729_v34 = vpop.permute.xlu0 %728 }
 0x29d   : > { %1274 = vpow2.f32 %v405_v21  ;;  %v734_v36 = vsel %vm347_vm1, %v729_v34, 0 }
 0x2a7   : > { %v1275_v22 = vpop.eup %1274 }
 0x2a8   : > { %v407_v23 = vsel %vm347_vm1, %v1275_v22, 0.0 }
 0x2a9   : > { %408 = vadd.xlane.f32.xlu1 %v407_v23 }
 0x2ba   : > { %472 = vrot.lane.b32.xlu1 %v1855_v5, %s1533_s1  ;;  %s1932_s1 = scalar_lea.hbm %s1981_s5, %s1092_s23 }
 0x2be   : > { %601 = vrot.lane.b32.xlu1 %v1876_v24, %s1534_s14 }
 0x2c2   : > { %599 = vrot.lane.b32.xlu1 %v1876_v24, %s1535_s11 }
 0x2c6   : > { %726 = vrot.lane.b32.xlu1 %v1868_v16, %s1536_s0 }
 0x336   : > { %v409_v26 = vpop.xlane.xlu1 %408 }
 0x337   : > { %1276 = vrcp.f32 %v409_v26 }
 0x33a   : > { %v473_v29 = vpop.permute.xlu1 %472 }
 0x33e   : > { %v602_v32 = vpop.permute.xlu1 %601 }
 0x33f   : > { %v607_v33 = vsel %vm347_vm1, %v602_v32, 0 }
 0x341   : > { %v1277_v27 = vpop.eup %1276 }
 0x342   : > { %v411_v28 = vmul.f32 %v1277_v27, %v1275_v22  ;;  %v600_v35 = vpop.permute.xlu1 %599 }
 0x344   : > { %v412_v30 = vpack.c.bf16 %v411_v28, %v411_v28 }
 0x346   : > { %1126 = vmatmul.mubr.msk.bf16.vlgmr.msra.gmra.mrb[0].mxu1 %vm347_vm1, %v412_v30  ;;  %v727_v37 = vpop.permute.xlu1 %726 }
 0x347   : > { %1130 = vmatpush3.bf16.xpose.msra.mxu1 %v480_v31  ;;  %1131 = vmatprep.mubr.msk.bf16.mxu1 %vm1528_vm0, %v1527_v0 }
 0x348   : > { %1141 = vmatprep.subr.bf16.mxu1 %v1527_v0 }
 0x34e   : > { %1132 = vmatmul.mubr.msk.bf16.vlgmr.msra.gmra.mrb[4].mxu1 %vm347_vm1, %v473_v29 }
 0x34f   : > { %1142 = vmatpush3.bf16.xpose.msra.mxu1 %v607_v33  ;;  %1143 = vmatprep.mubr.msk.bf16.mxu1 %vm1528_vm0, %v1527_v0 }
 0x350   : > { %1153 = vmatprep.subr.bf16.mxu1 %v1527_v0 }
 0x356   : > { %1144 = vmatmul.mubr.msk.bf16.vlgmr.msra.gmra.mrb[8].mxu1 %vm347_vm1, %v600_v35 }
 0x357   : > { %1154 = vmatpush3.bf16.xpose.msra.mxu1 %v734_v36  ;;  %1155 = vmatprep.mubr.msk.bf16.mxu1 %vm1528_vm0, %v1527_v0 }
 0x358   : > { %1165 = vmatprep.subr.bf16.mxu1 %v1527_v0 }
 0x35e   : > { %1156 = vmatmul.mubr.msk.bf16.vlgmr.msra.gmra.mrb[12].mxu1 %vm347_vm1, %v727_v37 }
 0x35f   : > { %1169 = vmatprep.mubr.msk.bf16.mxu1 %vm1528_vm0, %v1527_v0 }
 0x419   : > { %v456_v38 = vpop.f32.mrb[0].mxu1 }
 0x41a   : > { %v462_v39 = vpack.c.bf16 %v456_v38, %v456_v38  ;;  %v1127_v40 = vpop.f32.mrb[1].mxu1 }
 0x41b   : > { %v459_v41 = vpop.f32.mrb[2].mxu1 }
 0x41c   : > { %464 = vst.msk [vmem:[#allocation2] sm:$0xf] %vm463_vm3, %v462_v39  ;;  %v1128_v42 = vpop.f32.mrb[3].mxu1 }
 0x421   : > { %v516_v44 = vpop.f32.mrb[4].mxu1 }
 0x422   : > { %v517_v45 = vadd.f32 %v516_v44, %v468_v43  ;;  %v1133_v46 = vpop.f32.mrb[5].mxu1  ;;  %v1272_v43 = vld [vmem:[#allocation9] sm:$0xff]  }
 0x423   : > { %v519_v47 = vpop.f32.mrb[6].mxu1  ;;  %1166 = vmatpush3.bf16.msra.mxu1 %v1272_v43 }
 0x424   : > { %v1134_v49 = vpop.f32.mrb[7].mxu1  ;;  %v522_v50 = vadd.f32 %v1863_v9, %v517_v45  ;;  %v1273_v45 = vld [vmem:[#allocation9 + $0x8] sm:$0xff]   ;;  %1167 = vmatprep.subr.bf16.mxu1 %v1527_v0 }
 0x426   : > { %v523_v51 = vsel %vm347_vm1, %v522_v50, -inf }
 0x427   : > { %524 = vmax.xlane.f32.xlu1 %v523_v51  ;;  %1168 = vmatpush3.bf16.msra.mxu1 %v1273_v45 }
 0x429   : > { %v643_v53 = vpop.f32.mrb[8].mxu1 }
 0x42a   : > { %v644_v54 = vadd.f32 %v643_v53, %v595_v52  ;;  %v1145_v55 = vpop.f32.mrb[9].mxu1 }
 0x42b   : > { %v646_v56 = vpop.f32.mrb[10].mxu1 }
 0x42c   : > { %v649_v57 = vadd.f32 %v1863_v9, %v644_v54  ;;  %v1146_v58 = vpop.f32.mrb[11].mxu1 }
 0x42d   : > { %v907_v58 = vld [vmem:[%s301_s16] sm:$0xf]  ;;  %s1543_s16 = smov [#allocation12]  }
 0x42e   : > { %v650_v59 = vsel %vm347_vm1, %v649_v57, -inf  ;;  %s1440_s14 = sshll.u32 %s1543_s16, 4  ;;  %s1441_s14 = int_to_ptr.vmem [resolvable:$false] %s1440_s14 }
 0x42f   : > { %651 = vmax.xlane.f32.xlu0 %v650_v59  ;;  %v908_v59 = vunpack.c.l.bf16 %v907_v58  ;;  %s1442_s11 = scalar_lea.vmem %s1441_s14, 128  ;;  %p1443_p13 = scmp.lt.s32.totalorder %s1934_s24, %s1441_s14 }
 0x430   : > { %p1444_p2 = scmp.lt.s32.totalorder %s1442_s11, %s1436_s6 }
 0x431   : > { %v770_v61 = vpop.f32.mrb[12].mxu1 }
 0x432   : > { %v771_v62 = vadd.f32 %v770_v61, %v722_v60  ;;  %v1157_v63 = vpop.f32.mrb[13].mxu1  ;;  %p1445_p5 = por %p1444_p2, %p1443_p13 }
 0x433   : > { %v773_v1 = vpop.f32.mrb[14].mxu1 }
 0x434   : > { %v776_v2 = vadd.f32 %v1863_v9, %v771_v62  ;;  %v1158_v3 = vpop.f32.mrb[15].mxu1  ;;  %p1446_p12 = pnand %p1445_p5, %p1439_p7 }
 0x436   : > { %v777_v4 = vsel %vm347_vm1, %v776_v2, -inf }
 0x437   : > { %778 = vmax.xlane.f32.xlu1 %v777_v4 }
 0x4b4   : > { %v525_v6 = vpop.xlane.xlu1 %524 }
 0x4b5   : > { %v526_v7 = vsub.f32 %v522_v50, %v525_v6 }
 0x4b7   : > { %v527_v8 = vmul.f32 1.442695, %v526_v7 }
 0x4b9   : > { %1278 = vpow2.f32 %v527_v8 }
 0x4bc   : > { %v652_v9 = vpop.xlane.xlu0 %651 }
 0x4bd   : > { %v653_v18 = vsub.f32 %v649_v57, %v652_v9 }
 0x4bf   : > { %v654_v19 = vmul.f32 1.442695, %v653_v18 }
 0x4c3   : > { %v1279_v10 = vpop.eup %1278 }
 0x4c4   : > { %v779_v11 = vpop.xlane.xlu1 %778  ;;  %v529_v12 = vsel %vm347_vm1, %v1279_v10, 0.0 }
 0x4c5   : > { %v780_v13 = vsub.f32 %v776_v2, %v779_v11  ;;  %530 = vadd.xlane.f32.xlu1 %v529_v12 }
 0x4c7   : > { %v781_v14 = vmul.f32 1.442695, %v780_v13 }
 0x4c9   : > { %1280 = vpow2.f32 %v781_v14 }
 0x4ca   : > { %1282 = vpow2.f32 %v654_v19 }
 0x4d3   : > { %v1281_v15 = vpop.eup %1280 }
 0x4d4   : > { %v783_v17 = vsel %vm347_vm1, %v1281_v15, 0.0  ;;  %v1283_v20 = vpop.eup %1282 }
 0x4d5   : > { %784 = vadd.xlane.f32.xlu0 %v783_v17  ;;  %v656_v21 = vsel %vm347_vm1, %v1283_v20, 0.0 }
 0x4d6   : > { %535 = vrot.lane.b32.xlu1 %v1855_v5, %s1537_s27 }
 0x4eb   : > { %662 = vrot.lane.b32.xlu0 %v1876_v24, %s1538_s15 }
 0x4fa   : > { %657 = vadd.xlane.f32.xlu1 %v656_v21 }
 0x50b   : > { %789 = vrot.lane.b32.xlu1 %v1868_v16, %s1539_s13 }
 0x552   : > { %v531_v22 = vpop.xlane.xlu1 %530 }
 0x553   : > { %1284 = vrcp.f32 %v531_v22 }
 0x556   : > { %v536_v23 = vpop.permute.xlu1 %535 }
 0x557   : > { %v541_v25 = vsel %vm418_vm2, %v536_v23, 0 }
 0x558   : > { %1136 = vmatpush3.bf16.msra.mxu0 %v541_v25 }
 0x559   : > { %1147 = vmatprep.subr.bf16.mxu0 %v1527_v0 }
 0x55d   : > { %v1285_v5 = vpop.eup %1284 }
 0x55e   : > { %v533_v26 = vmul.f32 %v1285_v5, %v1279_v10 }
 0x560   : > { %v534_v27 = vpack.c.bf16 %v533_v26, %v533_v26 }
 0x562   : > { %1138 = vmatmul.mubr.msk.bf16.vlgmr.msra.gmra.mrb[4].mxu0 %vm347_vm1, %v534_v27  ;;  %v785_v24 = vpop.xlane.xlu0 %784 }
 0x563   : > { %1149 = vmatprep.mubr.msk.bf16.mxu0 %vm1528_vm0, %v1527_v0 }
 0x566   : > { %v663_v28 = vpop.permute.xlu0 %662 }
 0x567   : > { %v668_v16 = vsel %vm418_vm2, %v663_v28, 0 }
 0x568   : > { %1148 = vmatpush3.bf16.msra.mxu0 %v668_v16 }
 0x569   : > { %1159 = vmatprep.subr.bf16.mxu0 %v1527_v0 }
 0x587   : > { %v658_v29 = vpop.xlane.xlu1 %657 }
 0x588   : > { %1286 = vrcp.f32 %v658_v29 }
 0x589   : > { %1288 = vrcp.f32 %v785_v24 }
 0x58b   : > { %v790_v31 = vpop.permute.xlu1 %789 }
 0x58c   : > { %v795_v33 = vsel %vm418_vm2, %v790_v31, 0 }
 0x592   : > { %v1287_v30 = vpop.eup %1286 }
 0x593   : > { %v660_v32 = vmul.f32 %v1287_v30, %v1283_v20  ;;  %v1289_v35 = vpop.eup %1288 }
 0x594   : > { %v787_v36 = vmul.f32 %v1289_v35, %v1281_v15 }
 0x595   : > { %v661_v34 = vpack.c.bf16 %v660_v32, %v660_v32 }
 0x596   : > { %v788_v37 = vpack.c.bf16 %v787_v36, %v787_v36 }
 0x597   : > { %1150 = vmatmul.mubr.msk.bf16.vlgmr.msra.gmra.mrb[8].mxu0 %vm347_vm1, %v661_v34 }
 0x598   : > { %1160 = vmatpush3.bf16.msra.mxu0 %v795_v33  ;;  %1161 = vmatprep.mubr.msk.bf16.mxu0 %vm1528_vm0, %v1527_v0 }
 0x59f   : > { %1162 = vmatmul.mubr.msk.bf16.vlgmr.msra.gmra.mrb[12].mxu0 %vm347_vm1, %v788_v37 }
 0x635   : > { %v577_v38 = vpop.f32.mrb[4].mxu0 }
 0x636   : > { %v1095_v39 = vpack.c.bf16 %v577_v38, %v577_v38  ;;  %v1139_v40 = vpop.f32.mrb[5].mxu0 }
 0x637   : > { %v580_v41 = vpop.f32.mrb[6].mxu0 }
 0x638   : > { %v1140_v42 = vpop.f32.mrb[7].mxu0  ;;  %587 = vrot.lane.b32.xlu1 %v1095_v39, %s1540_s28 }
 0x66a   : > { %v704_v44 = vpop.f32.mrb[8].mxu0 }
 0x66b   : > { %v1096_v46 = vpack.c.bf16 %v704_v44, %v704_v44  ;;  %v1151_v47 = vpop.f32.mrb[9].mxu0 }
 0x66c   : > { %v707_v48 = vpop.f32.mrb[10].mxu0 }
 0x66d   : > { %714 = vrot.lane.b32.xlu0 %v1096_v46, %s1541_s10  ;;  %v1152_v49 = vpop.f32.mrb[11].mxu0 }
 0x672   : > { %v831_v50 = vpop.f32.mrb[12].mxu0 }
 0x673   : > { %v1097_v51 = vpack.c.bf16 %v831_v50, %v831_v50  ;;  %v1163_v52 = vpop.f32.mrb[13].mxu0 }
 0x674   : > { %v834_v53 = vpop.f32.mrb[14].mxu0 }
 0x675   : > { %841 = vrot.lane.b32.xlu1 %v1097_v51, %s1542_s26  ;;  %v1164_v54 = vpop.f32.mrb[15].mxu0 }
 0x6aa   : > { %v588_v55 = vpop.permute.xlu1 %587 }
 0x6ab   : > { %591 = vst.msk [vmem:[#allocation2] sm:$0xf] %vm590_vm4, %v588_v55 }
 0x6df   : > { %v715_v0 = vpop.permute.xlu0 %714 }
 0x6e0   : > { %718 = vst.msk [vmem:[#allocation2] sm:$0xf] %vm717_vm5, %v715_v0 }
 0x6e7   : > { %v842_v56 = vpop.permute.xlu1 %841 }
 0x6e8   : > { %845 = vst.msk [vmem:[#allocation2] sm:$0xf] %vm844_vm6, %v842_v56 }
 0x6ef   : > { %v846_v57 = vld [vmem:[#allocation2] sm:$0xf] }
 0x6f0   : > { %1170 = vmatmul.mubr.msk.bf16.vlgmr.msra.gmra.mrb[16].mxu1 %vm863_vm7, %v846_v57 }
 0x7c3   : > { %v901_v60 = vpop.f32.mrb[16].mxu1 }
 0x7c4   : > { %v909_v61 = vadd.f32 %v908_v59, %v901_v60  ;;  %v1171_v62 = vpop.f32.mrb[17].mxu1 }
 0x7c5   : > { %v904_v63 = vpop.f32.mrb[18].mxu1 }
 0x7c6   : > { %v910_v1 = vpack.c.bf16 %v909_v61, %v909_v61  ;;  %v1172_v2 = vpop.f32.mrb[19].mxu1 }
 0x7c8   : > { %912 = vst.msk [vmem:[%s336_s17] sm:$0xf] %vm911_vm8, %v910_v1 }
 0x7c9   : > { %1449 = shalt.err (!%p1446_p12)
}
 0x7ca   : > { %s1450_s7 = scalar_lea.hbm %s1932_s1, 64  ;;  %s1454_s15 = scalar_lea.hbm %s1981_s5, 128 }
 0x7cb   : > { %p1451_p3 = scmp.ne.s32.totalorder %s1932_s1, %s1450_s7  ;;  %p1455_p1 = scmp.lt.u32.totalorder %s1932_s1, %s1981_s5 }
 0x7cc   : > { %p1456_p6 = scmp.lt.u32.totalorder %s1454_s15, %s1450_s7  ;;  %p1458_p4 = scmp.lt.u32.totalorder %s1450_s7, %s1932_s1 }
 0x7cd   : > { %p1452_p0 = pnand %p1451_p3, %p2025_p9 }
 0x7ce   : > { %p1457_p10 = por %p1456_p6, %p1455_p1 }
 0x7cf   : > { %p1453_p8 = pneg %p1452_p0 }
 0x7d0   : > { %p1459_p11 = por %p1458_p4, %p1457_p10 }
 0x7d2   : > { %p1460_p7 = pnand %p1459_p11, %p1453_p8 }
 0x7d4   : > { %1463 = shalt.err (!%p1460_p7)
}
 0x7d5   : > { %1187 = dma.vmem_to_hbm [thread:$0]  (%p2025_p9), %s1934_s24, 64, %s1932_s1, %s914_s22  }
 0x7d6 PF: > { %s939_s10 = sand.u32 1, %s1506_s18   ;;  %p2026_p13 = scmp.ne.s32.totalorder %s2000_s25, 0 }
 0x7d7   : > { %p2027_p2 = scmp.ge.s32.totalorder %s1518_s21, 2  ;;  %s940_s26 = scalar_lea.sflag [#allocation5], %s939_s10 }
 0x7d9   : > { %p1207_p5 = pnand %p2027_p2, %p2026_p13 }
 0x7db   : > { %1501 = dma.done.wait (!%p1207_p5), %s940_s26, 64  }
 0x7dc   : > { %1503 = vsyncadd (!%p1207_p5), %s940_s26, 4294967232  ;;  %p22_p12 = scmp.ge.s32.totalorder %s1630_s30, 4   ;;  %s2028_s18 = smov %s1510_s19 }
 0x7dd   : > { %s2029_s19 = smov %s1514_s20  ;;  %s2030_s20 = smov %s1670_s8 }
 0x7de   : > { %s2031_s21 = smov %s1630_s30  ;;  %24 = sbr.rel (!%p22_p12) target bundleno = 11 (0xb), region = 120 }
 0x7e5   :  { %945 = vsyncpa [#allocation4], 1 }
 0x7e6   :  { %947 = vsyncpa [#allocation4 + $0x1], 1 }
 0x7e7   :  { %948 = vsyncpa [#allocation7], 1 }
 0x7e8   :  { %949 = vsyncpa [#allocation11], 1 }
 0x7e9   :  { %951 = vsyncpa [#allocation11 + $0x1], 1 }
 0x7ea   :  { %952 = vsyncpa [#allocation5], 1 }
 0x7eb   :  { %954 = vsyncpa [#allocation5 + $0x1], 1 }

</bundles_post_ra>
